<compile_context>
chip_gen: v5e
topology: v5e:2x2
jax: 0.10.0
libtpu: 0.0.40
codegen_flags: <defaults>
</compile_context>

<pallas_src>
import jax
import jax.numpy as jnp
from jax import lax
from jax.experimental import pallas as pl
from jax.experimental.pallas import tpu as pltpu

# Set to jnp.bfloat16 on v6e/v7x for single-pass MXU matmuls (re-validate the
# tolerance in __main__ if you do); f32 keeps the self-check tight.
MATMUL_DTYPE = jnp.float32


def actor_kernel(x_ref, w_ih_ref, w_hh_ref, b_ref,
                 fc1_w_ref, fc1_b_ref, ln_g_ref, ln_b_ref,
                 fc2_w_ref, fc2_b_ref, out_ref, xp_ref):
    B, T, D = x_ref.shape
    H4 = w_hh_ref.shape[1]
    H = H4 // 4

    # ---- Hoisted input projection for all timesteps -> flat [T*B, 4H] -------
    # D is tiny (2): x @ W_ih is D broadcast-FMAs on the VPU (no MXU dot, no
    # transpose/reshape), written with static offsets into a dense scratch.
    xv = x_ref[...].astype(jnp.float32)                       # [B, T, D]
    w_ih = w_ih_ref[...].astype(jnp.float32)                  # [D, 4H]
    bias_b = jnp.broadcast_to(b_ref[...].astype(jnp.float32), (B, H4))
    for t in range(T):                                        # static, T == 8
        acc = bias_b
        for d in range(D):
            acc = acc + xv[:, t, d:d + 1] * w_ih[d:d + 1, :]
        xp_ref[pl.ds(t * B, B), :] = acc

    # ---- LSTM recurrence: one fused-gate MXU matmul + one sigmoid per step ---
    def step(t, carry):
        h, c = carry
        xt = xp_ref[pl.ds(t * B, B), :]                       # [B, 4H]
        gates = (jnp.dot(h.astype(w_hh_ref.dtype), w_hh_ref[...],
                         preferred_element_type=jnp.float32) + xt)
        sig = jax.nn.sigmoid(gates)                           # single EUP pass
        i = sig[:, 0 * H:1 * H]
        f = sig[:, 1 * H:2 * H]
        o = sig[:, 2 * H:3 * H]
        g = 2.0 * sig[:, 3 * H:4 * H] - 1.0                   # tanh(g) = 2*sig(2g)-1
        c_new = f * c + i * g
        h_new = o * jnp.tanh(c_new)
        return h_new, c_new

    h0 = jnp.zeros((B, H), jnp.float32)
    c0 = jnp.zeros((B, H), jnp.float32)
    h_last, _ = lax.fori_loop(0, T, step, (h0, c0), unroll=True)

    # ---- fc head on out[:, -1, :] (== h_last for a 1-layer LSTM) ------------
    z = (jnp.dot(h_last.astype(fc1_w_ref.dtype), fc1_w_ref[...],
                 preferred_element_type=jnp.float32) + fc1_b_ref[...])
    z = jnp.maximum(z, 0.0)                                   # ReLU
    mean = jnp.mean(z, axis=-1, keepdims=True)                # LayerNorm(32), eps=1e-5
    var = jnp.mean((z - mean) ** 2, axis=-1, keepdims=True)
    z = (z - mean) * lax.rsqrt(var + 1e-5) * ln_g_ref[...] + ln_b_ref[...]
    # TODO(synk): nn.Dropout(0.4) is identity in eval mode; training-mode mask not implemented.
    logits = (jnp.dot(z.astype(fc2_w_ref.dtype), fc2_w_ref[...],
                      preferred_element_type=jnp.float32) + fc2_b_ref[...])
    m = jnp.max(logits, axis=-1, keepdims=True)               # softmax(dim=-1)
    e = jnp.exp(logits - m)
    out_ref[...] = (e / jnp.sum(e, axis=-1, keepdims=True)).astype(out_ref.dtype)


def init_params(key, state_dim=2, hidden=64, mid=32, action_dim=4):
    """PyTorch-convention parameters (nn.LSTM / nn.Linear layouts, gate order i,f,g,o)."""
    ks = jax.random.split(key, 8)
    u = lambda k, shape, bound: jax.random.uniform(k, shape, jnp.float32, -bound, bound)
    kl = hidden ** -0.5
    return {
        "w_ih": u(ks[0], (4 * hidden, state_dim), kl),
        "w_hh": u(ks[1], (4 * hidden, hidden), kl),
        "b_ih": u(ks[2], (4 * hidden,), kl),
        "b_hh": u(ks[3], (4 * hidden,), kl),
        "fc1_w": u(ks[4], (mid, hidden), hidden ** -0.5),
        "fc1_b": u(ks[5], (mid,), hidden ** -0.5),
        "ln_g": jnp.ones((mid,), jnp.float32),
        "ln_b": jnp.zeros((mid,), jnp.float32),
        "fc2_w": u(ks[6], (action_dim, mid), mid ** -0.5),
        "fc2_b": u(ks[7], (action_dim,), mid ** -0.5),
    }


def prepare_kernel_params(params, matmul_dtype=MATMUL_DTYPE):
    """One-time weight prep: fuse LSTM gates as [in, 4H] in order (i, f, o, g),
    pre-scale the g-gate block by 2 (single-sigmoid trick), pre-sum the biases,
    transpose dense layers to [in, out]."""
    H4 = params["w_ih"].shape[0]
    H = H4 // 4

    def reorder_scale(w):  # w: [4H, X], PyTorch gate order (i, f, g, o) along dim 0
        wi, wf, wg, wo = w[0:H], w[H:2 * H], w[2 * H:3 * H], w[3 * H:4 * H]
        return jnp.concatenate([wi, wf, wo, 2.0 * wg], axis=0)   # -> (i, f, o, 2*g)

    b_fused = reorder_scale((params["b_ih"] + params["b_hh"])[:, None]).T  # [1, 4H]
    return {
        "w_ih": reorder_scale(params["w_ih"]).T.astype(matmul_dtype),      # [D, 4H]
        "w_hh": reorder_scale(params["w_hh"]).T.astype(matmul_dtype),      # [H, 4H]
        "b": b_fused.astype(jnp.float32),
        "fc1_w": params["fc1_w"].T.astype(matmul_dtype),                   # [H, mid]
        "fc1_b": params["fc1_b"][None, :].astype(jnp.float32),
        "ln_g": params["ln_g"][None, :].astype(jnp.float32),
        "ln_b": params["ln_b"][None, :].astype(jnp.float32),
        "fc2_w": params["fc2_w"].T.astype(matmul_dtype),                   # [mid, A]
        "fc2_b": params["fc2_b"][None, :].astype(jnp.float32),
    }


def actor_forward(s, kp):
    """s: [B, T, D] float32 (batch_first, as in PyTorch). Returns [B, action_dim].
    Note: batch many environments into one call (B multiple of 8+) to amortize
    the fixed per-call latency; the kernel is batch-size agnostic."""
    B, T, D = s.shape
    H = kp["w_hh"].shape[0]
    M = kp["fc1_w"].shape[1]
    A = kp["fc2_w"].shape[1]
    x = s.astype(jnp.float32)
    args = (x, kp["w_ih"], kp["w_hh"], kp["b"], kp["fc1_w"], kp["fc1_b"],
            kp["ln_g"], kp["ln_b"], kp["fc2_w"], kp["fc2_b"])

    flops = 2 * B * (T * 4 * H * (H + D) + H * M + M * A)
    transcendentals = B * (T * (4 * H + H) + A)
    bytes_accessed = sum(int(a.size) * a.dtype.itemsize for a in args) + B * A * 4

    vmem = pl.BlockSpec(memory_space=pltpu.MemorySpace.VMEM)
    return pl.pallas_call(
        actor_kernel,
        out_shape=jax.ShapeDtypeStruct((B, A), jnp.float32),
        in_specs=[vmem] * len(args),
        out_specs=vmem,
        scratch_shapes=[pltpu.VMEM((T * B, 4 * H), jnp.float32)],  # flat, dense (8,128) tiles
        cost_estimate=pl.CostEstimate(flops=int(flops),
                                      transcendentals=int(transcendentals),
                                      bytes_accessed=int(bytes_accessed)),
    )(*args)


def actor_forward_ref(s, params):
    """Pure-JAX reference with PyTorch semantics (gate order i, f, g, o)."""
    B, T, D = s.shape
    H = params["w_hh"].shape[1]
    w_ih = params["w_ih"].T
    w_hh = params["w_hh"].T
    b = (params["b_ih"] + params["b_hh"])[None, :]
    h = jnp.zeros((B, H), jnp.float32)
    c = jnp.zeros((B, H), jnp.float32)
    for t in range(T):
        gates = s[:, t, :] @ w_ih + h @ w_hh + b
        i = jax.nn.sigmoid(gates[:, 0 * H:1 * H])
        f = jax.nn.sigmoid(gates[:, 1 * H:2 * H])
        g = jnp.tanh(gates[:, 2 * H:3 * H])
        o = jax.nn.sigmoid(gates[:, 3 * H:4 * H])
        c = f * c + i * g
        h = o * jnp.tanh(c)
    z = jnp.maximum(h @ params["fc1_w"].T + params["fc1_b"], 0.0)
    mean = jnp.mean(z, axis=-1, keepdims=True)
    var = jnp.mean((z - mean) ** 2, axis=-1, keepdims=True)
    z = (z - mean) / jnp.sqrt(var + 1e-5) * params["ln_g"] + params["ln_b"]
    logits = z @ params["fc2_w"].T + params["fc2_b"]
    return jax.nn.softmax(logits, axis=-1)


if __name__ == "__main__":
    key = jax.random.PRNGKey(0)
    k_param, k_input = jax.random.split(key)

    B, T, state_dim, action_dim = 2, 8, 2, 4
    params = init_params(k_param, state_dim=state_dim, hidden=64, mid=32,
                         action_dim=action_dim)
    kparams = prepare_kernel_params(params)
    s = jax.random.normal(k_input, (B, T, state_dim), jnp.float32)

    probs = jax.block_until_ready(actor_forward(s, kparams))
    ref = actor_forward_ref(s, params)

    assert probs.shape == (B, action_dim)
    assert bool(jnp.all(jnp.isfinite(probs)))
    assert bool(jnp.allclose(jnp.sum(probs, axis=-1), 1.0, atol=1e-4))   # exact divide
    assert bool(jnp.allclose(probs, ref, atol=2e-3, rtol=2e-3))

    print("KERNEL_OK")
</pallas_src>

<mosaic_0001>
module attributes {stable_mosaic.version = 11 : i64} {
  func.func @actor_kernel(%arg0: memref<2x8x2xf32, #tpu.memory_space<vmem>>, %arg1: memref<2x256xf32, #tpu.memory_space<vmem>>, %arg2: memref<64x256xf32, #tpu.memory_space<vmem>>, %arg3: memref<1x256xf32, #tpu.memory_space<vmem>>, %arg4: memref<64x32xf32, #tpu.memory_space<vmem>>, %arg5: memref<1x32xf32, #tpu.memory_space<vmem>>, %arg6: memref<1x32xf32, #tpu.memory_space<vmem>>, %arg7: memref<1x32xf32, #tpu.memory_space<vmem>>, %arg8: memref<32x4xf32, #tpu.memory_space<vmem>>, %arg9: memref<1x4xf32, #tpu.memory_space<vmem>>, %arg10: memref<2x4xf32, #tpu.memory_space<vmem>>, %arg11: memref<16x256xf32, #tpu.memory_space<vmem>>) attributes {dimension_semantics = [], scalar_prefetch = 0 : i64, scratch_operands = 1 : i64, tpu.core_type = #tpu.core_type<tc>} {
    %c0 = arith.constant 0 : index
    %c0_0 = arith.constant 0 : index
    %c0_1 = arith.constant 0 : index
    %0 = vector.load %arg0[%c0, %c0_0, %c0_1] : memref<2x8x2xf32, #tpu.memory_space<vmem>>, vector<2x8x2xf32>
    %c0_2 = arith.constant 0 : index
    %c0_3 = arith.constant 0 : index
    %1 = vector.load %arg1[%c0_2, %c0_3] : memref<2x256xf32, #tpu.memory_space<vmem>>, vector<2x256xf32>
    %c0_4 = arith.constant 0 : index
    %c0_5 = arith.constant 0 : index
    %2 = vector.load %arg3[%c0_4, %c0_5] : memref<1x256xf32, #tpu.memory_space<vmem>>, vector<1x256xf32>
    %3 = vector.shape_cast %2 : vector<1x256xf32> to vector<1x256xf32>
    %4 = vector.broadcast %3 : vector<1x256xf32> to vector<2x256xf32>
    %5 = vector.extract_strided_slice %0 {offsets = [0, 0, 0], sizes = [2, 1, 1], strides = [1, 1, 1]} : vector<2x8x2xf32> to vector<2x1x1xf32>
    %6 = vector.shape_cast %5 : vector<2x1x1xf32> to vector<2x1xf32>
    %7 = vector.extract_strided_slice %1 {offsets = [0, 0], sizes = [1, 256], strides = [1, 1]} : vector<2x256xf32> to vector<1x256xf32>
    %8 = vector.broadcast %6 : vector<2x1xf32> to vector<2x256xf32>
    %9 = vector.broadcast %7 : vector<1x256xf32> to vector<2x256xf32>
    %10 = arith.mulf %8, %9 : vector<2x256xf32>
    %11 = arith.addf %4, %10 : vector<2x256xf32>
    %12 = vector.extract_strided_slice %0 {offsets = [0, 0, 1], sizes = [2, 1, 1], strides = [1, 1, 1]} : vector<2x8x2xf32> to vector<2x1x1xf32>
    %13 = vector.shape_cast %12 : vector<2x1x1xf32> to vector<2x1xf32>
    %14 = vector.extract_strided_slice %1 {offsets = [1, 0], sizes = [1, 256], strides = [1, 1]} : vector<2x256xf32> to vector<1x256xf32>
    %15 = vector.broadcast %13 : vector<2x1xf32> to vector<2x256xf32>
    %16 = vector.broadcast %14 : vector<1x256xf32> to vector<2x256xf32>
    %17 = arith.mulf %15, %16 : vector<2x256xf32>
    %18 = arith.addf %11, %17 : vector<2x256xf32>
    %c0_6 = arith.constant 0 : index
    %c0_7 = arith.constant 0 : index
    %19 = vector.load %arg11[%c0_6, %c0_7] : memref<16x256xf32, #tpu.memory_space<vmem>>, vector<2x256xf32>
    tpu.vector_store %arg11[%c0_6, %c0_7], %18 {strides = array<i32>} : memref<16x256xf32, #tpu.memory_space<vmem>>, vector<2x256xf32>,
    %20 = vector.extract_strided_slice %0 {offsets = [0, 1, 0], sizes = [2, 1, 1], strides = [1, 1, 1]} : vector<2x8x2xf32> to vector<2x1x1xf32>
    %21 = vector.shape_cast %20 : vector<2x1x1xf32> to vector<2x1xf32>
    %22 = vector.extract_strided_slice %1 {offsets = [0, 0], sizes = [1, 256], strides = [1, 1]} : vector<2x256xf32> to vector<1x256xf32>
    %23 = vector.broadcast %21 : vector<2x1xf32> to vector<2x256xf32>
    %24 = vector.broadcast %22 : vector<1x256xf32> to vector<2x256xf32>
    %25 = arith.mulf %23, %24 : vector<2x256xf32>
    %26 = arith.addf %4, %25 : vector<2x256xf32>
    %27 = vector.extract_strided_slice %0 {offsets = [0, 1, 1], sizes = [2, 1, 1], strides = [1, 1, 1]} : vector<2x8x2xf32> to vector<2x1x1xf32>
    %28 = vector.shape_cast %27 : vector<2x1x1xf32> to vector<2x1xf32>
    %29 = vector.extract_strided_slice %1 {offsets = [1, 0], sizes = [1, 256], strides = [1, 1]} : vector<2x256xf32> to vector<1x256xf32>
    %30 = vector.broadcast %28 : vector<2x1xf32> to vector<2x256xf32>
    %31 = vector.broadcast %29 : vector<1x256xf32> to vector<2x256xf32>
    %32 = arith.mulf %30, %31 : vector<2x256xf32>
    %33 = arith.addf %26, %32 : vector<2x256xf32>
    %c2 = arith.constant 2 : index
    %c0_8 = arith.constant 0 : index
    %34 = vector.load %arg11[%c2, %c0_8] : memref<16x256xf32, #tpu.memory_space<vmem>>, vector<2x256xf32>
    tpu.vector_store %arg11[%c2, %c0_8], %33 {strides = array<i32>} : memref<16x256xf32, #tpu.memory_space<vmem>>, vector<2x256xf32>,
    %35 = vector.extract_strided_slice %0 {offsets = [0, 2, 0], sizes = [2, 1, 1], strides = [1, 1, 1]} : vector<2x8x2xf32> to vector<2x1x1xf32>
    %36 = vector.shape_cast %35 : vector<2x1x1xf32> to vector<2x1xf32>
    %37 = vector.extract_strided_slice %1 {offsets = [0, 0], sizes = [1, 256], strides = [1, 1]} : vector<2x256xf32> to vector<1x256xf32>
    %38 = vector.broadcast %36 : vector<2x1xf32> to vector<2x256xf32>
    %39 = vector.broadcast %37 : vector<1x256xf32> to vector<2x256xf32>
    %40 = arith.mulf %38, %39 : vector<2x256xf32>
    %41 = arith.addf %4, %40 : vector<2x256xf32>
    %42 = vector.extract_strided_slice %0 {offsets = [0, 2, 1], sizes = [2, 1, 1], strides = [1, 1, 1]} : vector<2x8x2xf32> to vector<2x1x1xf32>
    %43 = vector.shape_cast %42 : vector<2x1x1xf32> to vector<2x1xf32>
    %44 = vector.extract_strided_slice %1 {offsets = [1, 0], sizes = [1, 256], strides = [1, 1]} : vector<2x256xf32> to vector<1x256xf32>
    %45 = vector.broadcast %43 : vector<2x1xf32> to vector<2x256xf32>
    %46 = vector.broadcast %44 : vector<1x256xf32> to vector<2x256xf32>
    %47 = arith.mulf %45, %46 : vector<2x256xf32>
    %48 = arith.addf %41, %47 : vector<2x256xf32>
    %c4 = arith.constant 4 : index
    %c0_9 = arith.constant 0 : index
    %49 = vector.load %arg11[%c4, %c0_9] : memref<16x256xf32, #tpu.memory_space<vmem>>, vector<2x256xf32>
    tpu.vector_store %arg11[%c4, %c0_9], %48 {strides = array<i32>} : memref<16x256xf32, #tpu.memory_space<vmem>>, vector<2x256xf32>,
    %50 = vector.extract_strided_slice %0 {offsets = [0, 3, 0], sizes = [2, 1, 1], strides = [1, 1, 1]} : vector<2x8x2xf32> to vector<2x1x1xf32>
    %51 = vector.shape_cast %50 : vector<2x1x1xf32> to vector<2x1xf32>
    %52 = vector.extract_strided_slice %1 {offsets = [0, 0], sizes = [1, 256], strides = [1, 1]} : vector<2x256xf32> to vector<1x256xf32>
    %53 = vector.broadcast %51 : vector<2x1xf32> to vector<2x256xf32>
    %54 = vector.broadcast %52 : vector<1x256xf32> to vector<2x256xf32>
    %55 = arith.mulf %53, %54 : vector<2x256xf32>
    %56 = arith.addf %4, %55 : vector<2x256xf32>
    %57 = vector.extract_strided_slice %0 {offsets = [0, 3, 1], sizes = [2, 1, 1], strides = [1, 1, 1]} : vector<2x8x2xf32> to vector<2x1x1xf32>
    %58 = vector.shape_cast %57 : vector<2x1x1xf32> to vector<2x1xf32>
    %59 = vector.extract_strided_slice %1 {offsets = [1, 0], sizes = [1, 256], strides = [1, 1]} : vector<2x256xf32> to vector<1x256xf32>
    %60 = vector.broadcast %58 : vector<2x1xf32> to vector<2x256xf32>
    %61 = vector.broadcast %59 : vector<1x256xf32> to vector<2x256xf32>
    %62 = arith.mulf %60, %61 : vector<2x256xf32>
    %63 = arith.addf %56, %62 : vector<2x256xf32>
    %c6 = arith.constant 6 : index
    %c0_10 = arith.constant 0 : index
    %64 = vector.load %arg11[%c6, %c0_10] : memref<16x256xf32, #tpu.memory_space<vmem>>, vector<2x256xf32>
    tpu.vector_store %arg11[%c6, %c0_10], %63 {strides = array<i32>} : memref<16x256xf32, #tpu.memory_space<vmem>>, vector<2x256xf32>,
    %65 = vector.extract_strided_slice %0 {offsets = [0, 4, 0], sizes = [2, 1, 1], strides = [1, 1, 1]} : vector<2x8x2xf32> to vector<2x1x1xf32>
    %66 = vector.shape_cast %65 : vector<2x1x1xf32> to vector<2x1xf32>
    %67 = vector.extract_strided_slice %1 {offsets = [0, 0], sizes = [1, 256], strides = [1, 1]} : vector<2x256xf32> to vector<1x256xf32>
    %68 = vector.broadcast %66 : vector<2x1xf32> to vector<2x256xf32>
    %69 = vector.broadcast %67 : vector<1x256xf32> to vector<2x256xf32>
    %70 = arith.mulf %68, %69 : vector<2x256xf32>
    %71 = arith.addf %4, %70 : vector<2x256xf32>
    %72 = vector.extract_strided_slice %0 {offsets = [0, 4, 1], sizes = [2, 1, 1], strides = [1, 1, 1]} : vector<2x8x2xf32> to vector<2x1x1xf32>
    %73 = vector.shape_cast %72 : vector<2x1x1xf32> to vector<2x1xf32>
    %74 = vector.extract_strided_slice %1 {offsets = [1, 0], sizes = [1, 256], strides = [1, 1]} : vector<2x256xf32> to vector<1x256xf32>
    %75 = vector.broadcast %73 : vector<2x1xf32> to vector<2x256xf32>
    %76 = vector.broadcast %74 : vector<1x256xf32> to vector<2x256xf32>
    %77 = arith.mulf %75, %76 : vector<2x256xf32>
    %78 = arith.addf %71, %77 : vector<2x256xf32>
    %c8 = arith.constant 8 : index
    %c0_11 = arith.constant 0 : index
    %79 = vector.load %arg11[%c8, %c0_11] : memref<16x256xf32, #tpu.memory_space<vmem>>, vector<2x256xf32>
    tpu.vector_store %arg11[%c8, %c0_11], %78 {strides = array<i32>} : memref<16x256xf32, #tpu.memory_space<vmem>>, vector<2x256xf32>,
    %80 = vector.extract_strided_slice %0 {offsets = [0, 5, 0], sizes = [2, 1, 1], strides = [1, 1, 1]} : vector<2x8x2xf32> to vector<2x1x1xf32>
    %81 = vector.shape_cast %80 : vector<2x1x1xf32> to vector<2x1xf32>
    %82 = vector.extract_strided_slice %1 {offsets = [0, 0], sizes = [1, 256], strides = [1, 1]} : vector<2x256xf32> to vector<1x256xf32>
    %83 = vector.broadcast %81 : vector<2x1xf32> to vector<2x256xf32>
    %84 = vector.broadcast %82 : vector<1x256xf32> to vector<2x256xf32>
    %85 = arith.mulf %83, %84 : vector<2x256xf32>
    %86 = arith.addf %4, %85 : vector<2x256xf32>
    %87 = vector.extract_strided_slice %0 {offsets = [0, 5, 1], sizes = [2, 1, 1], strides = [1, 1, 1]} : vector<2x8x2xf32> to vector<2x1x1xf32>
    %88 = vector.shape_cast %87 : vector<2x1x1xf32> to vector<2x1xf32>
    %89 = vector.extract_strided_slice %1 {offsets = [1, 0], sizes = [1, 256], strides = [1, 1]} : vector<2x256xf32> to vector<1x256xf32>
    %90 = vector.broadcast %88 : vector<2x1xf32> to vector<2x256xf32>
    %91 = vector.broadcast %89 : vector<1x256xf32> to vector<2x256xf32>
    %92 = arith.mulf %90, %91 : vector<2x256xf32>
    %93 = arith.addf %86, %92 : vector<2x256xf32>
    %c10 = arith.constant 10 : index
    %c0_12 = arith.constant 0 : index
    %94 = vector.load %arg11[%c10, %c0_12] : memref<16x256xf32, #tpu.memory_space<vmem>>, vector<2x256xf32>
    tpu.vector_store %arg11[%c10, %c0_12], %93 {strides = array<i32>} : memref<16x256xf32, #tpu.memory_space<vmem>>, vector<2x256xf32>,
    %95 = vector.extract_strided_slice %0 {offsets = [0, 6, 0], sizes = [2, 1, 1], strides = [1, 1, 1]} : vector<2x8x2xf32> to vector<2x1x1xf32>
    %96 = vector.shape_cast %95 : vector<2x1x1xf32> to vector<2x1xf32>
    %97 = vector.extract_strided_slice %1 {offsets = [0, 0], sizes = [1, 256], strides = [1, 1]} : vector<2x256xf32> to vector<1x256xf32>
    %98 = vector.broadcast %96 : vector<2x1xf32> to vector<2x256xf32>
    %99 = vector.broadcast %97 : vector<1x256xf32> to vector<2x256xf32>
    %100 = arith.mulf %98, %99 : vector<2x256xf32>
    %101 = arith.addf %4, %100 : vector<2x256xf32>
    %102 = vector.extract_strided_slice %0 {offsets = [0, 6, 1], sizes = [2, 1, 1], strides = [1, 1, 1]} : vector<2x8x2xf32> to vector<2x1x1xf32>
    %103 = vector.shape_cast %102 : vector<2x1x1xf32> to vector<2x1xf32>
    %104 = vector.extract_strided_slice %1 {offsets = [1, 0], sizes = [1, 256], strides = [1, 1]} : vector<2x256xf32> to vector<1x256xf32>
    %105 = vector.broadcast %103 : vector<2x1xf32> to vector<2x256xf32>
    %106 = vector.broadcast %104 : vector<1x256xf32> to vector<2x256xf32>
    %107 = arith.mulf %105, %106 : vector<2x256xf32>
    %108 = arith.addf %101, %107 : vector<2x256xf32>
    %c12 = arith.constant 12 : index
    %c0_13 = arith.constant 0 : index
    %109 = vector.load %arg11[%c12, %c0_13] : memref<16x256xf32, #tpu.memory_space<vmem>>, vector<2x256xf32>
    tpu.vector_store %arg11[%c12, %c0_13], %108 {strides = array<i32>} : memref<16x256xf32, #tpu.memory_space<vmem>>, vector<2x256xf32>,
    %110 = vector.extract_strided_slice %0 {offsets = [0, 7, 0], sizes = [2, 1, 1], strides = [1, 1, 1]} : vector<2x8x2xf32> to vector<2x1x1xf32>
    %111 = vector.shape_cast %110 : vector<2x1x1xf32> to vector<2x1xf32>
    %112 = vector.extract_strided_slice %1 {offsets = [0, 0], sizes = [1, 256], strides = [1, 1]} : vector<2x256xf32> to vector<1x256xf32>
    %113 = vector.broadcast %111 : vector<2x1xf32> to vector<2x256xf32>
    %114 = vector.broadcast %112 : vector<1x256xf32> to vector<2x256xf32>
    %115 = arith.mulf %113, %114 : vector<2x256xf32>
    %116 = arith.addf %4, %115 : vector<2x256xf32>
    %117 = vector.extract_strided_slice %0 {offsets = [0, 7, 1], sizes = [2, 1, 1], strides = [1, 1, 1]} : vector<2x8x2xf32> to vector<2x1x1xf32>
    %118 = vector.shape_cast %117 : vector<2x1x1xf32> to vector<2x1xf32>
    %119 = vector.extract_strided_slice %1 {offsets = [1, 0], sizes = [1, 256], strides = [1, 1]} : vector<2x256xf32> to vector<1x256xf32>
    %120 = vector.broadcast %118 : vector<2x1xf32> to vector<2x256xf32>
    %121 = vector.broadcast %119 : vector<1x256xf32> to vector<2x256xf32>
    %122 = arith.mulf %120, %121 : vector<2x256xf32>
    %123 = arith.addf %116, %122 : vector<2x256xf32>
    %c14 = arith.constant 14 : index
    %c0_14 = arith.constant 0 : index
    %124 = vector.load %arg11[%c14, %c0_14] : memref<16x256xf32, #tpu.memory_space<vmem>>, vector<2x256xf32>
    tpu.vector_store %arg11[%c14, %c0_14], %123 {strides = array<i32>} : memref<16x256xf32, #tpu.memory_space<vmem>>, vector<2x256xf32>,
    %cst = arith.constant 0.000000e+00 : f32
    %125 = vector.broadcast %cst : f32 to vector<2x64xf32>
    %cst_15 = arith.constant 0.000000e+00 : f32
    %126 = vector.broadcast %cst_15 : f32 to vector<2x64xf32>
    %c0_i32 = arith.constant 0 : i32
    %c2_i32 = arith.constant 2 : i32
    %127 = arith.muli %c0_i32, %c2_i32 : i32
    %128 = arith.index_cast %127 : i32 to index
    %c0_16 = arith.constant 0 : index
    %129 = vector.load %arg11[%128, %c0_16] : memref<16x256xf32, #tpu.memory_space<vmem>>, vector<2x256xf32>
    %c0_17 = arith.constant 0 : index
    %c0_18 = arith.constant 0 : index
    %130 = vector.load %arg2[%c0_17, %c0_18] : memref<64x256xf32, #tpu.memory_space<vmem>>, vector<64x256xf32>
    %cst_19 = arith.constant dense<0.000000e+00> : vector<2x256xf32>
    %131 = tpu.matmul %125, %130, %cst_19 {dimension_numbers = #tpu.dot_dimension_numbers<[1], [0], [0], [1], [0, 0, 1, 1], [], []>} : vector<2x64xf32>, vector<64x256xf32>, vector<2x256xf32> -> vector<2x256xf32>
    %132 = arith.addf %131, %129 : vector<2x256xf32>
    %133 = arith.negf %132 : vector<2x256xf32>
    %134 = math.exp %133 : vector<2x256xf32>
    %cst_20 = arith.constant 1.000000e+00 : f32
    %135 = vector.broadcast %cst_20 : f32 to vector<2x256xf32>
    %136 = arith.addf %135, %134 : vector<2x256xf32>
    %137 = arith.divf %135, %136 : vector<2x256xf32>
    %138 = vector.extract_strided_slice %137 {offsets = [0, 0], sizes = [2, 64], strides = [1, 1]} : vector<2x256xf32> to vector<2x64xf32>
    %139 = vector.extract_strided_slice %137 {offsets = [0, 64], sizes = [2, 64], strides = [1, 1]} : vector<2x256xf32> to vector<2x64xf32>
    %140 = vector.extract_strided_slice %137 {offsets = [0, 128], sizes = [2, 64], strides = [1, 1]} : vector<2x256xf32> to vector<2x64xf32>
    %141 = vector.extract_strided_slice %137 {offsets = [0, 192], sizes = [2, 64], strides = [1, 1]} : vector<2x256xf32> to vector<2x64xf32>
    %cst_21 = arith.constant 2.000000e+00 : f32
    %142 = vector.broadcast %cst_21 : f32 to vector<2x64xf32>
    %143 = arith.mulf %142, %141 : vector<2x64xf32>
    %cst_22 = arith.constant 1.000000e+00 : f32
    %144 = vector.broadcast %cst_22 : f32 to vector<2x64xf32>
    %145 = arith.subf %143, %144 : vector<2x64xf32>
    %146 = arith.mulf %139, %126 : vector<2x64xf32>
    %147 = arith.mulf %138, %145 : vector<2x64xf32>
    %148 = arith.addf %146, %147 : vector<2x64xf32>
    %149 = math.tanh %148 : vector<2x64xf32>
    %150 = arith.mulf %140, %149 : vector<2x64xf32>
    %c1_i32 = arith.constant 1 : i32
    %c2_i32_23 = arith.constant 2 : i32
    %151 = arith.muli %c1_i32, %c2_i32_23 : i32
    %152 = arith.index_cast %151 : i32 to index
    %c0_24 = arith.constant 0 : index
    %153 = vector.load %arg11[%152, %c0_24] : memref<16x256xf32, #tpu.memory_space<vmem>>, vector<2x256xf32>
    %c0_25 = arith.constant 0 : index
    %c0_26 = arith.constant 0 : index
    %154 = vector.load %arg2[%c0_25, %c0_26] : memref<64x256xf32, #tpu.memory_space<vmem>>, vector<64x256xf32>
    %cst_27 = arith.constant dense<0.000000e+00> : vector<2x256xf32>
    %155 = tpu.matmul %150, %154, %cst_27 {dimension_numbers = #tpu.dot_dimension_numbers<[1], [0], [0], [1], [0, 0, 1, 1], [], []>} : vector<2x64xf32>, vector<64x256xf32>, vector<2x256xf32> -> vector<2x256xf32>
    %156 = arith.addf %155, %153 : vector<2x256xf32>
    %157 = arith.negf %156 : vector<2x256xf32>
    %158 = math.exp %157 : vector<2x256xf32>
    %cst_28 = arith.constant 1.000000e+00 : f32
    %159 = vector.broadcast %cst_28 : f32 to vector<2x256xf32>
    %160 = arith.addf %159, %158 : vector<2x256xf32>
    %161 = arith.divf %159, %160 : vector<2x256xf32>
    %162 = vector.extract_strided_slice %161 {offsets = [0, 0], sizes = [2, 64], strides = [1, 1]} : vector<2x256xf32> to vector<2x64xf32>
    %163 = vector.extract_strided_slice %161 {offsets = [0, 64], sizes = [2, 64], strides = [1, 1]} : vector<2x256xf32> to vector<2x64xf32>
    %164 = vector.extract_strided_slice %161 {offsets = [0, 128], sizes = [2, 64], strides = [1, 1]} : vector<2x256xf32> to vector<2x64xf32>
    %165 = vector.extract_strided_slice %161 {offsets = [0, 192], sizes = [2, 64], strides = [1, 1]} : vector<2x256xf32> to vector<2x64xf32>
    %cst_29 = arith.constant 2.000000e+00 : f32
    %166 = vector.broadcast %cst_29 : f32 to vector<2x64xf32>
    %167 = arith.mulf %166, %165 : vector<2x64xf32>
    %cst_30 = arith.constant 1.000000e+00 : f32
    %168 = vector.broadcast %cst_30 : f32 to vector<2x64xf32>
    %169 = arith.subf %167, %168 : vector<2x64xf32>
    %170 = arith.mulf %163, %148 : vector<2x64xf32>
    %171 = arith.mulf %162, %169 : vector<2x64xf32>
    %172 = arith.addf %170, %171 : vector<2x64xf32>
    %173 = math.tanh %172 : vector<2x64xf32>
    %174 = arith.mulf %164, %173 : vector<2x64xf32>
    %c2_i32_31 = arith.constant 2 : i32
    %c2_i32_32 = arith.constant 2 : i32
    %175 = arith.muli %c2_i32_31, %c2_i32_32 : i32
    %176 = arith.index_cast %175 : i32 to index
    %c0_33 = arith.constant 0 : index
    %177 = vector.load %arg11[%176, %c0_33] : memref<16x256xf32, #tpu.memory_space<vmem>>, vector<2x256xf32>
    %c0_34 = arith.constant 0 : index
    %c0_35 = arith.constant 0 : index
    %178 = vector.load %arg2[%c0_34, %c0_35] : memref<64x256xf32, #tpu.memory_space<vmem>>, vector<64x256xf32>
    %cst_36 = arith.constant dense<0.000000e+00> : vector<2x256xf32>
    %179 = tpu.matmul %174, %178, %cst_36 {dimension_numbers = #tpu.dot_dimension_numbers<[1], [0], [0], [1], [0, 0, 1, 1], [], []>} : vector<2x64xf32>, vector<64x256xf32>, vector<2x256xf32> -> vector<2x256xf32>
    %180 = arith.addf %179, %177 : vector<2x256xf32>
    %181 = arith.negf %180 : vector<2x256xf32>
    %182 = math.exp %181 : vector<2x256xf32>
    %cst_37 = arith.constant 1.000000e+00 : f32
    %183 = vector.broadcast %cst_37 : f32 to vector<2x256xf32>
    %184 = arith.addf %183, %182 : vector<2x256xf32>
    %185 = arith.divf %183, %184 : vector<2x256xf32>
    %186 = vector.extract_strided_slice %185 {offsets = [0, 0], sizes = [2, 64], strides = [1, 1]} : vector<2x256xf32> to vector<2x64xf32>
    %187 = vector.extract_strided_slice %185 {offsets = [0, 64], sizes = [2, 64], strides = [1, 1]} : vector<2x256xf32> to vector<2x64xf32>
    %188 = vector.extract_strided_slice %185 {offsets = [0, 128], sizes = [2, 64], strides = [1, 1]} : vector<2x256xf32> to vector<2x64xf32>
    %189 = vector.extract_strided_slice %185 {offsets = [0, 192], sizes = [2, 64], strides = [1, 1]} : vector<2x256xf32> to vector<2x64xf32>
    %cst_38 = arith.constant 2.000000e+00 : f32
    %190 = vector.broadcast %cst_38 : f32 to vector<2x64xf32>
    %191 = arith.mulf %190, %189 : vector<2x64xf32>
    %cst_39 = arith.constant 1.000000e+00 : f32
    %192 = vector.broadcast %cst_39 : f32 to vector<2x64xf32>
    %193 = arith.subf %191, %192 : vector<2x64xf32>
    %194 = arith.mulf %187, %172 : vector<2x64xf32>
    %195 = arith.mulf %186, %193 : vector<2x64xf32>
    %196 = arith.addf %194, %195 : vector<2x64xf32>
    %197 = math.tanh %196 : vector<2x64xf32>
    %198 = arith.mulf %188, %197 : vector<2x64xf32>
    %c3_i32 = arith.constant 3 : i32
    %c2_i32_40 = arith.constant 2 : i32
    %199 = arith.muli %c3_i32, %c2_i32_40 : i32
    %200 = arith.index_cast %199 : i32 to index
    %c0_41 = arith.constant 0 : index
    %201 = vector.load %arg11[%200, %c0_41] : memref<16x256xf32, #tpu.memory_space<vmem>>, vector<2x256xf32>
    %c0_42 = arith.constant 0 : index
    %c0_43 = arith.constant 0 : index
    %202 = vector.load %arg2[%c0_42, %c0_43] : memref<64x256xf32, #tpu.memory_space<vmem>>, vector<64x256xf32>
    %cst_44 = arith.constant dense<0.000000e+00> : vector<2x256xf32>
    %203 = tpu.matmul %198, %202, %cst_44 {dimension_numbers = #tpu.dot_dimension_numbers<[1], [0], [0], [1], [0, 0, 1, 1], [], []>} : vector<2x64xf32>, vector<64x256xf32>, vector<2x256xf32> -> vector<2x256xf32>
    %204 = arith.addf %203, %201 : vector<2x256xf32>
    %205 = arith.negf %204 : vector<2x256xf32>
    %206 = math.exp %205 : vector<2x256xf32>
    %cst_45 = arith.constant 1.000000e+00 : f32
    %207 = vector.broadcast %cst_45 : f32 to vector<2x256xf32>
    %208 = arith.addf %207, %206 : vector<2x256xf32>
    %209 = arith.divf %207, %208 : vector<2x256xf32>
    %210 = vector.extract_strided_slice %209 {offsets = [0, 0], sizes = [2, 64], strides = [1, 1]} : vector<2x256xf32> to vector<2x64xf32>
    %211 = vector.extract_strided_slice %209 {offsets = [0, 64], sizes = [2, 64], strides = [1, 1]} : vector<2x256xf32> to vector<2x64xf32>
    %212 = vector.extract_strided_slice %209 {offsets = [0, 128], sizes = [2, 64], strides = [1, 1]} : vector<2x256xf32> to vector<2x64xf32>
    %213 = vector.extract_strided_slice %209 {offsets = [0, 192], sizes = [2, 64], strides = [1, 1]} : vector<2x256xf32> to vector<2x64xf32>
    %cst_46 = arith.constant 2.000000e+00 : f32
    %214 = vector.broadcast %cst_46 : f32 to vector<2x64xf32>
    %215 = arith.mulf %214, %213 : vector<2x64xf32>
    %cst_47 = arith.constant 1.000000e+00 : f32
    %216 = vector.broadcast %cst_47 : f32 to vector<2x64xf32>
    %217 = arith.subf %215, %216 : vector<2x64xf32>
    %218 = arith.mulf %211, %196 : vector<2x64xf32>
    %219 = arith.mulf %210, %217 : vector<2x64xf32>
    %220 = arith.addf %218, %219 : vector<2x64xf32>
    %221 = math.tanh %220 : vector<2x64xf32>
    %222 = arith.mulf %212, %221 : vector<2x64xf32>
    %c4_i32 = arith.constant 4 : i32
    %c2_i32_48 = arith.constant 2 : i32
    %223 = arith.muli %c4_i32, %c2_i32_48 : i32
    %224 = arith.index_cast %223 : i32 to index
    %c0_49 = arith.constant 0 : index
    %225 = vector.load %arg11[%224, %c0_49] : memref<16x256xf32, #tpu.memory_space<vmem>>, vector<2x256xf32>
    %c0_50 = arith.constant 0 : index
    %c0_51 = arith.constant 0 : index
    %226 = vector.load %arg2[%c0_50, %c0_51] : memref<64x256xf32, #tpu.memory_space<vmem>>, vector<64x256xf32>
    %cst_52 = arith.constant dense<0.000000e+00> : vector<2x256xf32>
    %227 = tpu.matmul %222, %226, %cst_52 {dimension_numbers = #tpu.dot_dimension_numbers<[1], [0], [0], [1], [0, 0, 1, 1], [], []>} : vector<2x64xf32>, vector<64x256xf32>, vector<2x256xf32> -> vector<2x256xf32>
    %228 = arith.addf %227, %225 : vector<2x256xf32>
    %229 = arith.negf %228 : vector<2x256xf32>
    %230 = math.exp %229 : vector<2x256xf32>
    %cst_53 = arith.constant 1.000000e+00 : f32
    %231 = vector.broadcast %cst_53 : f32 to vector<2x256xf32>
    %232 = arith.addf %231, %230 : vector<2x256xf32>
    %233 = arith.divf %231, %232 : vector<2x256xf32>
    %234 = vector.extract_strided_slice %233 {offsets = [0, 0], sizes = [2, 64], strides = [1, 1]} : vector<2x256xf32> to vector<2x64xf32>
    %235 = vector.extract_strided_slice %233 {offsets = [0, 64], sizes = [2, 64], strides = [1, 1]} : vector<2x256xf32> to vector<2x64xf32>
    %236 = vector.extract_strided_slice %233 {offsets = [0, 128], sizes = [2, 64], strides = [1, 1]} : vector<2x256xf32> to vector<2x64xf32>
    %237 = vector.extract_strided_slice %233 {offsets = [0, 192], sizes = [2, 64], strides = [1, 1]} : vector<2x256xf32> to vector<2x64xf32>
    %cst_54 = arith.constant 2.000000e+00 : f32
    %238 = vector.broadcast %cst_54 : f32 to vector<2x64xf32>
    %239 = arith.mulf %238, %237 : vector<2x64xf32>
    %cst_55 = arith.constant 1.000000e+00 : f32
    %240 = vector.broadcast %cst_55 : f32 to vector<2x64xf32>
    %241 = arith.subf %239, %240 : vector<2x64xf32>
    %242 = arith.mulf %235, %220 : vector<2x64xf32>
    %243 = arith.mulf %234, %241 : vector<2x64xf32>
    %244 = arith.addf %242, %243 : vector<2x64xf32>
    %245 = math.tanh %244 : vector<2x64xf32>
    %246 = arith.mulf %236, %245 : vector<2x64xf32>
    %c5_i32 = arith.constant 5 : i32
    %c2_i32_56 = arith.constant 2 : i32
    %247 = arith.muli %c5_i32, %c2_i32_56 : i32
    %248 = arith.index_cast %247 : i32 to index
    %c0_57 = arith.constant 0 : index
    %249 = vector.load %arg11[%248, %c0_57] : memref<16x256xf32, #tpu.memory_space<vmem>>, vector<2x256xf32>
    %c0_58 = arith.constant 0 : index
    %c0_59 = arith.constant 0 : index
    %250 = vector.load %arg2[%c0_58, %c0_59] : memref<64x256xf32, #tpu.memory_space<vmem>>, vector<64x256xf32>
    %cst_60 = arith.constant dense<0.000000e+00> : vector<2x256xf32>
    %251 = tpu.matmul %246, %250, %cst_60 {dimension_numbers = #tpu.dot_dimension_numbers<[1], [0], [0], [1], [0, 0, 1, 1], [], []>} : vector<2x64xf32>, vector<64x256xf32>, vector<2x256xf32> -> vector<2x256xf32>
    %252 = arith.addf %251, %249 : vector<2x256xf32>
    %253 = arith.negf %252 : vector<2x256xf32>
    %254 = math.exp %253 : vector<2x256xf32>
    %cst_61 = arith.constant 1.000000e+00 : f32
    %255 = vector.broadcast %cst_61 : f32 to vector<2x256xf32>
    %256 = arith.addf %255, %254 : vector<2x256xf32>
    %257 = arith.divf %255, %256 : vector<2x256xf32>
    %258 = vector.extract_strided_slice %257 {offsets = [0, 0], sizes = [2, 64], strides = [1, 1]} : vector<2x256xf32> to vector<2x64xf32>
    %259 = vector.extract_strided_slice %257 {offsets = [0, 64], sizes = [2, 64], strides = [1, 1]} : vector<2x256xf32> to vector<2x64xf32>
    %260 = vector.extract_strided_slice %257 {offsets = [0, 128], sizes = [2, 64], strides = [1, 1]} : vector<2x256xf32> to vector<2x64xf32>
    %261 = vector.extract_strided_slice %257 {offsets = [0, 192], sizes = [2, 64], strides = [1, 1]} : vector<2x256xf32> to vector<2x64xf32>
    %cst_62 = arith.constant 2.000000e+00 : f32
    %262 = vector.broadcast %cst_62 : f32 to vector<2x64xf32>
    %263 = arith.mulf %262, %261 : vector<2x64xf32>
    %cst_63 = arith.constant 1.000000e+00 : f32
    %264 = vector.broadcast %cst_63 : f32 to vector<2x64xf32>
    %265 = arith.subf %263, %264 : vector<2x64xf32>
    %266 = arith.mulf %259, %244 : vector<2x64xf32>
    %267 = arith.mulf %258, %265 : vector<2x64xf32>
    %268 = arith.addf %266, %267 : vector<2x64xf32>
    %269 = math.tanh %268 : vector<2x64xf32>
    %270 = arith.mulf %260, %269 : vector<2x64xf32>
    %c6_i32 = arith.constant 6 : i32
    %c2_i32_64 = arith.constant 2 : i32
    %271 = arith.muli %c6_i32, %c2_i32_64 : i32
    %272 = arith.index_cast %271 : i32 to index
    %c0_65 = arith.constant 0 : index
    %273 = vector.load %arg11[%272, %c0_65] : memref<16x256xf32, #tpu.memory_space<vmem>>, vector<2x256xf32>
    %c0_66 = arith.constant 0 : index
    %c0_67 = arith.constant 0 : index
    %274 = vector.load %arg2[%c0_66, %c0_67] : memref<64x256xf32, #tpu.memory_space<vmem>>, vector<64x256xf32>
    %cst_68 = arith.constant dense<0.000000e+00> : vector<2x256xf32>
    %275 = tpu.matmul %270, %274, %cst_68 {dimension_numbers = #tpu.dot_dimension_numbers<[1], [0], [0], [1], [0, 0, 1, 1], [], []>} : vector<2x64xf32>, vector<64x256xf32>, vector<2x256xf32> -> vector<2x256xf32>
    %276 = arith.addf %275, %273 : vector<2x256xf32>
    %277 = arith.negf %276 : vector<2x256xf32>
    %278 = math.exp %277 : vector<2x256xf32>
    %cst_69 = arith.constant 1.000000e+00 : f32
    %279 = vector.broadcast %cst_69 : f32 to vector<2x256xf32>
    %280 = arith.addf %279, %278 : vector<2x256xf32>
    %281 = arith.divf %279, %280 : vector<2x256xf32>
    %282 = vector.extract_strided_slice %281 {offsets = [0, 0], sizes = [2, 64], strides = [1, 1]} : vector<2x256xf32> to vector<2x64xf32>
    %283 = vector.extract_strided_slice %281 {offsets = [0, 64], sizes = [2, 64], strides = [1, 1]} : vector<2x256xf32> to vector<2x64xf32>
    %284 = vector.extract_strided_slice %281 {offsets = [0, 128], sizes = [2, 64], strides = [1, 1]} : vector<2x256xf32> to vector<2x64xf32>
    %285 = vector.extract_strided_slice %281 {offsets = [0, 192], sizes = [2, 64], strides = [1, 1]} : vector<2x256xf32> to vector<2x64xf32>
    %cst_70 = arith.constant 2.000000e+00 : f32
    %286 = vector.broadcast %cst_70 : f32 to vector<2x64xf32>
    %287 = arith.mulf %286, %285 : vector<2x64xf32>
    %cst_71 = arith.constant 1.000000e+00 : f32
    %288 = vector.broadcast %cst_71 : f32 to vector<2x64xf32>
    %289 = arith.subf %287, %288 : vector<2x64xf32>
    %290 = arith.mulf %283, %268 : vector<2x64xf32>
    %291 = arith.mulf %282, %289 : vector<2x64xf32>
    %292 = arith.addf %290, %291 : vector<2x64xf32>
    %293 = math.tanh %292 : vector<2x64xf32>
    %294 = arith.mulf %284, %293 : vector<2x64xf32>
    %c7_i32 = arith.constant 7 : i32
    %c2_i32_72 = arith.constant 2 : i32
    %295 = arith.muli %c7_i32, %c2_i32_72 : i32
    %296 = arith.index_cast %295 : i32 to index
    %c0_73 = arith.constant 0 : index
    %297 = vector.load %arg11[%296, %c0_73] : memref<16x256xf32, #tpu.memory_space<vmem>>, vector<2x256xf32>
    %c0_74 = arith.constant 0 : index
    %c0_75 = arith.constant 0 : index
    %298 = vector.load %arg2[%c0_74, %c0_75] : memref<64x256xf32, #tpu.memory_space<vmem>>, vector<64x256xf32>
    %cst_76 = arith.constant dense<0.000000e+00> : vector<2x256xf32>
    %299 = tpu.matmul %294, %298, %cst_76 {dimension_numbers = #tpu.dot_dimension_numbers<[1], [0], [0], [1], [0, 0, 1, 1], [], []>} : vector<2x64xf32>, vector<64x256xf32>, vector<2x256xf32> -> vector<2x256xf32>
    %300 = arith.addf %299, %297 : vector<2x256xf32>
    %301 = arith.negf %300 : vector<2x256xf32>
    %302 = math.exp %301 : vector<2x256xf32>
    %cst_77 = arith.constant 1.000000e+00 : f32
    %303 = vector.broadcast %cst_77 : f32 to vector<2x256xf32>
    %304 = arith.addf %303, %302 : vector<2x256xf32>
    %305 = arith.divf %303, %304 : vector<2x256xf32>
    %306 = vector.extract_strided_slice %305 {offsets = [0, 0], sizes = [2, 64], strides = [1, 1]} : vector<2x256xf32> to vector<2x64xf32>
    %307 = vector.extract_strided_slice %305 {offsets = [0, 64], sizes = [2, 64], strides = [1, 1]} : vector<2x256xf32> to vector<2x64xf32>
    %308 = vector.extract_strided_slice %305 {offsets = [0, 128], sizes = [2, 64], strides = [1, 1]} : vector<2x256xf32> to vector<2x64xf32>
    %309 = vector.extract_strided_slice %305 {offsets = [0, 192], sizes = [2, 64], strides = [1, 1]} : vector<2x256xf32> to vector<2x64xf32>
    %cst_78 = arith.constant 2.000000e+00 : f32
    %310 = vector.broadcast %cst_78 : f32 to vector<2x64xf32>
    %311 = arith.mulf %310, %309 : vector<2x64xf32>
    %cst_79 = arith.constant 1.000000e+00 : f32
    %312 = vector.broadcast %cst_79 : f32 to vector<2x64xf32>
    %313 = arith.subf %311, %312 : vector<2x64xf32>
    %314 = arith.mulf %307, %292 : vector<2x64xf32>
    %315 = arith.mulf %306, %313 : vector<2x64xf32>
    %316 = arith.addf %314, %315 : vector<2x64xf32>
    %317 = math.tanh %316 : vector<2x64xf32>
    %318 = arith.mulf %308, %317 : vector<2x64xf32>
    %c8_i32 = arith.constant 8 : i32
    %c0_80 = arith.constant 0 : index
    %c0_81 = arith.constant 0 : index
    %319 = vector.load %arg4[%c0_80, %c0_81] : memref<64x32xf32, #tpu.memory_space<vmem>>, vector<64x32xf32>
    %cst_82 = arith.constant dense<0.000000e+00> : vector<2x32xf32>
    %320 = tpu.matmul %318, %319, %cst_82 {dimension_numbers = #tpu.dot_dimension_numbers<[1], [0], [0], [1], [0, 0, 1, 1], [], []>} : vector<2x64xf32>, vector<64x32xf32>, vector<2x32xf32> -> vector<2x32xf32>
    %c0_83 = arith.constant 0 : index
    %c0_84 = arith.constant 0 : index
    %321 = vector.load %arg5[%c0_83, %c0_84] : memref<1x32xf32, #tpu.memory_space<vmem>>, vector<1x32xf32>
    %322 = vector.broadcast %321 : vector<1x32xf32> to vector<2x32xf32>
    %323 = arith.addf %320, %322 : vector<2x32xf32>
    %cst_85 = arith.constant 0.000000e+00 : f32
    %324 = vector.broadcast %cst_85 : f32 to vector<2x32xf32>
    %325 = arith.maximumf %323, %324 : vector<2x32xf32>
    %cst_86 = arith.constant dense<0.000000e+00> : vector<2xf32>
    %326 = vector.multi_reduction <add>, %325, %cst_86 [1] : vector<2x32xf32> to vector<2xf32>
    %327 = vector.shape_cast %326 : vector<2xf32> to vector<2x1xf32>
    %cst_87 = arith.constant 3.200000e+01 : f32
    %328 = vector.broadcast %cst_87 : f32 to vector<2x1xf32>
    %329 = arith.divf %327, %328 : vector<2x1xf32>
    %330 = vector.broadcast %329 : vector<2x1xf32> to vector<2x32xf32>
    %331 = arith.subf %325, %330 : vector<2x32xf32>
    %332 = arith.mulf %331, %331 : vector<2x32xf32>
    %cst_88 = arith.constant dense<0.000000e+00> : vector<2xf32>
    %333 = vector.multi_reduction <add>, %332, %cst_88 [1] : vector<2x32xf32> to vector<2xf32>
    %334 = vector.shape_cast %333 : vector<2xf32> to vector<2x1xf32>
    %cst_89 = arith.constant 3.200000e+01 : f32
    %335 = vector.broadcast %cst_89 : f32 to vector<2x1xf32>
    %336 = arith.divf %334, %335 : vector<2x1xf32>
    %337 = vector.broadcast %329 : vector<2x1xf32> to vector<2x32xf32>
    %338 = arith.subf %325, %337 : vector<2x32xf32>
    %cst_90 = arith.constant 9.99999974E-6 : f32
    %339 = vector.broadcast %cst_90 : f32 to vector<2x1xf32>
    %340 = arith.addf %336, %339 : vector<2x1xf32>
    %341 = math.rsqrt %340 : vector<2x1xf32>
    %342 = vector.broadcast %341 : vector<2x1xf32> to vector<2x32xf32>
    %343 = arith.mulf %338, %342 : vector<2x32xf32>
    %c0_91 = arith.constant 0 : index
    %c0_92 = arith.constant 0 : index
    %344 = vector.load %arg6[%c0_91, %c0_92] : memref<1x32xf32, #tpu.memory_space<vmem>>, vector<1x32xf32>
    %345 = vector.broadcast %344 : vector<1x32xf32> to vector<2x32xf32>
    %346 = arith.mulf %343, %345 : vector<2x32xf32>
    %c0_93 = arith.constant 0 : index
    %c0_94 = arith.constant 0 : index
    %347 = vector.load %arg7[%c0_93, %c0_94] : memref<1x32xf32, #tpu.memory_space<vmem>>, vector<1x32xf32>
    %348 = vector.broadcast %347 : vector<1x32xf32> to vector<2x32xf32>
    %349 = arith.addf %346, %348 : vector<2x32xf32>
    %c0_95 = arith.constant 0 : index
    %c0_96 = arith.constant 0 : index
    %350 = vector.load %arg8[%c0_95, %c0_96] : memref<32x4xf32, #tpu.memory_space<vmem>>, vector<32x4xf32>
    %cst_97 = arith.constant dense<0.000000e+00> : vector<2x4xf32>
    %351 = tpu.matmul %349, %350, %cst_97 {dimension_numbers = #tpu.dot_dimension_numbers<[1], [0], [0], [1], [0, 0, 1, 1], [], []>} : vector<2x32xf32>, vector<32x4xf32>, vector<2x4xf32> -> vector<2x4xf32>
    %c0_98 = arith.constant 0 : index
    %c0_99 = arith.constant 0 : index
    %352 = vector.load %arg9[%c0_98, %c0_99] : memref<1x4xf32, #tpu.memory_space<vmem>>, vector<1x4xf32>
    %353 = vector.broadcast %352 : vector<1x4xf32> to vector<2x4xf32>
    %354 = arith.addf %351, %353 : vector<2x4xf32>
    %cst_100 = arith.constant dense<0xFF800000> : vector<2xf32>
    %355 = vector.multi_reduction <maximumf>, %354, %cst_100 [1] : vector<2x4xf32> to vector<2xf32>
    %356 = vector.shape_cast %355 : vector<2xf32> to vector<2x1xf32>
    %357 = vector.broadcast %356 : vector<2x1xf32> to vector<2x4xf32>
    %358 = arith.subf %354, %357 : vector<2x4xf32>
    %359 = math.exp %358 : vector<2x4xf32>
    %cst_101 = arith.constant dense<0.000000e+00> : vector<2xf32>
    %360 = vector.multi_reduction <add>, %359, %cst_101 [1] : vector<2x4xf32> to vector<2xf32>
    %361 = vector.shape_cast %360 : vector<2xf32> to vector<2x1xf32>
    %362 = vector.broadcast %361 : vector<2x1xf32> to vector<2x4xf32>
    %363 = arith.divf %359, %362 : vector<2x4xf32>
    %c0_102 = arith.constant 0 : index
    %c0_103 = arith.constant 0 : index
    %364 = vector.load %arg10[%c0_102, %c0_103] : memref<2x4xf32, #tpu.memory_space<vmem>>, vector<2x4xf32>
    tpu.vector_store %arg10[%c0_102, %c0_103], %363 {strides = array<i32>} : memref<2x4xf32, #tpu.memory_space<vmem>>, vector<2x4xf32>,
    return
  }
}

</mosaic_0001>

<bundles_post_ra>
// kernel: tpu_custom_call.1
= control target key start
LH: loop header
LB: loop body
LE: loop exit
PB: predicated region body
PF: predicated region fallthrough
CT: control target
= control target key end

     0   :  { %v1483_v5 = vmov 1   ;;  %v1484_v6 = vmov 0   ;;  %s2055_s0 = inlined_call_operand.vmem [shape: f32[2,8,2], index: 0, kind: input, shape index: {}]   ;;  %s2056_s1 = inlined_call_operand.vmem [shape: f32[2,256], index: 1, kind: input, shape index: {}]   ;;  %s2057_s2 = inlined_call_operand.vmem [shape: f32[64,256], index: 2, kind: input, shape index: {}]   ;;  %s2058_s3 = inlined_call_operand.vmem [shape: f32[1,256], index: 3, kind: input, shape index: {}]   ;;  %s2059_s4 = inlined_call_operand.vmem [shape: f32[64,32], index: 4, kind: input, shape index: {}]   ;;  %s2060_s5 = inlined_call_operand.vmem [shape: f32[1,32], index: 5, kind: input, shape index: {}]   ;;  %s2061_s6 = inlined_call_operand.vmem [shape: f32[1,32], index: 6, kind: input, shape index: {}]   ;;  %s2062_s7 = inlined_call_operand.vmem [shape: f32[1,32], index: 7, kind: input, shape index: {}]   ;;  %s2063_s8 = inlined_call_operand.vmem [shape: f32[32,4], index: 8, kind: input, shape index: {}]   ;;  %s2064_s9 = inlined_call_operand.vmem [shape: f32[1,4], index: 9, kind: input, shape index: {}]   ;;  %s2065_s10 = inlined_call_operand.hbm [shape: f32[2,4], index: 10, kind: output, shape index: {}]  }
   0x1   :  { %v1547_v0 = vld [vmem:[%s2057_s2 + $0x70] sm:$0xff]  ;;  %v1552_v1 = vld [vmem:[%s2057_s2 + $0x78] sm:$0xff]  ;;  %v37_v2 = vld [vmem:[%s2055_s0 + $0x8] sm:$0xff]  ;;  %1363 = vset.pattern.permute.xlu1 %v1483_v5  ;;  %1362 = vset.pattern.permute.xlu0 %v1484_v6 }
   0x2   :  { %327 = vmatpush.msra.mxu0 %v1547_v0  ;;  %347 = vmatpush.msra.mxu1 %v1552_v1  ;;  %v1562_v3 = vld [vmem:[%s2057_s2 + $0x60] sm:$0xff]  ;;  %v1567_v4 = vld [vmem:[%s2057_s2 + $0x68] sm:$0xff]  ;;  %v1573_v7 = vld [vmem:[%s2057_s2 + $0x50] sm:$0xff] }
   0x3   :  { %84 = vperm.xlu1 %1363, %v37_v2   ;;  %52 = vperm.xlu0 %1362, %v37_v2   ;;  %v1578_v8 = vld [vmem:[%s2057_s2 + $0x58] sm:$0xff]  ;;  %v1585_v9 = vld [vmem:[%s2057_s2 + $0x40] sm:$0xff]  ;;  %v1590_v10 = vld [vmem:[%s2057_s2 + $0x48] sm:$0xff] }
   0x4   :  { %328 = vmatpush.msra.mxu0 %v1562_v3  ;;  %348 = vmatpush.msra.mxu1 %v1567_v4  ;;  %v1599_v11 = vld [vmem:[%s2057_s2 + $0x30] sm:$0xff]  ;;  %v1604_v12 = vld [vmem:[%s2057_s2 + $0x38] sm:$0xff]  ;;  %v36_v13 = vld [vmem:[%s2055_s0] sm:$0xff] }
   0x5   :  { %435 = vmatpush.msra.mxu2 %v1547_v0  ;;  %455 = vmatpush.msra.mxu3 %v1552_v1 }
   0x6   :  { %329 = vmatpush.msra.mxu0 %v1573_v7  ;;  %349 = vmatpush.msra.mxu1 %v1578_v8 }
   0x7   :  { %436 = vmatpush.msra.mxu2 %v1562_v3  ;;  %456 = vmatpush.msra.mxu3 %v1567_v4 }
   0x8   :  { %330 = vmatpush.msra.mxu0 %v1585_v9  ;;  %350 = vmatpush.msra.mxu1 %v1590_v10 }
   0x9   :  { %15 = vsyncpa [#allocation4], 0  ;;  %v1616_v14 = vld [vmem:[%s2057_s2 + $0x20] sm:$0xff]  ;;  %v1621_v15 = vld [vmem:[%s2057_s2 + $0x28] sm:$0xff]  ;;  %437 = vmatpush.msra.mxu2 %v1573_v7  ;;  %457 = vmatpush.msra.mxu3 %v1578_v8  ;;  %v1485_v20 = vmov 0.0   ;;  %vm71_vm0 = vcmask 1041409  }
   0xa   :  { %331 = vmatpush.msra.mxu0 %v1599_v11  ;;  %351 = vmatpush.msra.mxu1 %v1604_v12  ;;  %v1630_v16 = vld [vmem:[%s2057_s2 + $0x10] sm:$0xff]  ;;  %v1635_v17 = vld [vmem:[%s2057_s2 + $0x18] sm:$0xff]  ;;  %v1642_v18 = vld [vmem:[%s2057_s2] sm:$0xff]  ;;  %vm315_vm9 = vcmask 523264   ;;  %s1307_s16 = sshll.u32 %s2065_s10, 4  ;;  %s1308_s16 = int_to_ptr.hbm [resolvable:$true] %s1307_s16 }
   0xb   :  { %80 = vperm.xlu1 %1363, %v36_v13   ;;  %47 = vperm.xlu0 %1362, %v36_v13   ;;  %v1647_v19 = vld [vmem:[%s2057_s2 + $0x8] sm:$0xff]  ;;  %v38_v21 = vld [vmem:[%s2056_s1] sm:$0xf]  ;;  %s1486_s1 = smov 64  }
   0xc   :  { %332 = vmatpush.msra.mxu0 %v1616_v14  ;;  %352 = vmatpush.msra.mxu1 %v1621_v15  ;;  %v87_v22 = vperm.slane %v38_v21, 1  ;;  %v88_v23 = vperm.slane %v38_v21, 3  ;;  %v56_v24 = vperm.slane %v38_v21, 0  ;;  %v57_v25 = vperm.slane %v38_v21, 2  ;;  %v39_v32 = vld [vmem:[%s2058_s3] sm:$0x3] }
   0xd   :  { %438 = vmatpush.msra.mxu2 %v1585_v9  ;;  %458 = vmatpush.msra.mxu3 %v1590_v10  ;;  %v1722_v35 = vperm.slane %v39_v32, 0  ;;  %v1729_v39 = vperm.slane %v39_v32, 1 }
   0xe   :  { %333 = vmatpush.msra.mxu0 %v1630_v16  ;;  %353 = vmatpush.msra.mxu1 %v1635_v17  ;;  %v91_v26 = vperm.slane %v87_v22, 1  ;;  %v92_v27 = vperm.slane %v88_v23, 1  ;;  %v60_v29 = vperm.slane %v56_v24, 0  ;;  %v61_v30 = vperm.slane %v57_v25, 0 }
   0xf   :  { %439 = vmatpush.msra.mxu2 %v1599_v11  ;;  %459 = vmatpush.msra.mxu3 %v1604_v12 }
  0x10   :  { %334 = vmatpush.msra.mxu0 %v1642_v18  ;;  %354 = vmatpush.msra.mxu1 %v1647_v19 }
  0x11   :  { %335 = vmatmul.f32.vlgmr.msra.gmra.mxu0 %v1485_v20  ;;  %355 = vmatmul.f32.vlgmr.msra.gmra.mxu1 %v1485_v20 }
  0x12   :  { %440 = vmatpush.msra.mxu2 %v1616_v14  ;;  %460 = vmatpush.msra.mxu3 %v1621_v15 }
  0x13   :  { %543 = vmatpush.msrb.mxu0 %v1547_v0  ;;  %563 = vmatpush.msrb.mxu1 %v1552_v1 }
  0x14   :  { %441 = vmatpush.msra.mxu2 %v1630_v16  ;;  %461 = vmatpush.msra.mxu3 %v1635_v17 }
  0x15   :  { %544 = vmatpush.msrb.mxu0 %v1562_v3  ;;  %564 = vmatpush.msrb.mxu1 %v1567_v4 }
  0x16   :  { %442 = vmatpush.msra.mxu2 %v1642_v18  ;;  %462 = vmatpush.msra.mxu3 %v1647_v19 }
  0x17   :  { %545 = vmatpush.msrb.mxu0 %v1573_v7  ;;  %565 = vmatpush.msrb.mxu1 %v1578_v8 }
  0x18   :  { %651 = vmatpush.msrb.mxu2 %v1547_v0  ;;  %671 = vmatpush.msrb.mxu3 %v1552_v1 }
  0x19   :  { %546 = vmatpush.msrb.mxu0 %v1585_v9  ;;  %566 = vmatpush.msrb.mxu1 %v1590_v10 }
  0x1a   :  { %652 = vmatpush.msrb.mxu2 %v1562_v3  ;;  %672 = vmatpush.msrb.mxu3 %v1567_v4 }
  0x1b   :  { %547 = vmatpush.msrb.mxu0 %v1599_v11  ;;  %567 = vmatpush.msrb.mxu1 %v1604_v12 }
  0x1c   :  { %653 = vmatpush.msrb.mxu2 %v1573_v7  ;;  %673 = vmatpush.msrb.mxu3 %v1578_v8 }
  0x1d   :  { %548 = vmatpush.msrb.mxu0 %v1616_v14  ;;  %568 = vmatpush.msrb.mxu1 %v1621_v15 }
  0x1e   :  { %654 = vmatpush.msrb.mxu2 %v1585_v9  ;;  %674 = vmatpush.msrb.mxu3 %v1590_v10 }
  0x1f   :  { %549 = vmatpush.msrb.mxu0 %v1630_v16  ;;  %569 = vmatpush.msrb.mxu1 %v1635_v17 }
  0x20   :  { %655 = vmatpush.msrb.mxu2 %v1599_v11  ;;  %675 = vmatpush.msrb.mxu3 %v1604_v12 }
  0x21   :  { %550 = vmatpush.msrb.mxu0 %v1642_v18  ;;  %570 = vmatpush.msrb.mxu1 %v1647_v19 }
  0x22   :  { %656 = vmatpush.msrb.mxu2 %v1616_v14  ;;  %676 = vmatpush.msrb.mxu3 %v1621_v15 }
  0x23   :  { %753 = vmatpush.msra.mxu0 %v1547_v0  ;;  %773 = vmatpush.msra.mxu1 %v1552_v1 }
  0x24   :  { %657 = vmatpush.msrb.mxu2 %v1630_v16  ;;  %677 = vmatpush.msrb.mxu3 %v1635_v17 }
  0x25   :  { %754 = vmatpush.msra.mxu0 %v1562_v3  ;;  %774 = vmatpush.msra.mxu1 %v1567_v4 }
  0x26   :  { %658 = vmatpush.msrb.mxu2 %v1642_v18  ;;  %678 = vmatpush.msrb.mxu3 %v1647_v19 }
  0x27   :  { %755 = vmatpush.msra.mxu0 %v1573_v7  ;;  %775 = vmatpush.msra.mxu1 %v1578_v8 }
  0x28   :  { %1364 = vset.pattern.permute.xlu0 %v1483_v5 }
  0x29   :  { %756 = vmatpush.msra.mxu0 %v1585_v9  ;;  %776 = vmatpush.msra.mxu1 %v1590_v10 }
  0x2b   :  { %757 = vmatpush.msra.mxu0 %v1599_v11  ;;  %777 = vmatpush.msra.mxu1 %v1604_v12 }
  0x2d   :  { %758 = vmatpush.msra.mxu0 %v1616_v14  ;;  %778 = vmatpush.msra.mxu1 %v1621_v15 }
  0x2f   :  { %759 = vmatpush.msra.mxu0 %v1630_v16  ;;  %779 = vmatpush.msra.mxu1 %v1635_v17 }
  0x31   :  { %760 = vmatpush.msra.mxu0 %v1642_v18  ;;  %780 = vmatpush.msra.mxu1 %v1647_v19 }
  0x75   :  { %v85_v28 = vpop.permute.xlu1 %84  ;;  %v53_v31 = vpop.permute.xlu0 %52 }
  0x76   :  { %v1718_v33 = vmul.f32 %v91_v26, %v85_v28  ;;  %v1720_v34 = vmul.f32 %v92_v27, %v85_v28  ;;  %v1725_v37 = vmul.f32 %v60_v29, %v53_v31  ;;  %v1727_v38 = vmul.f32 %v61_v30, %v53_v31 }
  0x78   :  { %v101_v36 = vrot.slane %v1718_v33, 7  ;;  %v103_v40 = vrot.slane %v1720_v34, 7  ;;  %v146_v41 = vrot.slane %v1718_v33, 1  ;;  %v70_v52 = vrot.slane %v1725_v37, 7 }
  0x79   :  { %v73_v53 = vrot.slane %v1727_v38, 7  ;;  %v136_v54 = vrot.slane %v1725_v37, 1  ;;  %v139_v55 = vrot.slane %v1727_v38, 1  ;;  %v164_v57 = vrot.slane %v1725_v37, 2 }
  0x7a   :  { %v167_v58 = vrot.slane %v1727_v38, 2  ;;  %v214_v62 = vrot.slane %v1725_v37, 4  ;;  %v217_v63 = vrot.slane %v1727_v38, 4  ;;  %v242_v6 = vrot.slane %v1725_v37, 5 }
  0x7b   :  { %v245_v13 = vrot.slane %v1727_v38, 5 }
  0x7d   :  { %v81_v56 = vpop.permute.xlu1 %80  ;;  %v48_v61 = vpop.permute.xlu0 %47 }
  0x7e   :  { %v1753_v2 = vmul.f32 %v91_v26, %v81_v56  ;;  %v1755_v5 = vmul.f32 %v92_v27, %v81_v56  ;;  %v1765_v24 = vmul.f32 %v60_v29, %v48_v61  ;;  %v1767_v25 = vmul.f32 %v61_v30, %v48_v61 }
  0x80   :  { %v102_v22 = vsel %vm71_vm0, %v101_v36, %v1753_v2  ;;  %v104_v23 = vsel %vm71_vm0, %v103_v40, %v1755_v5  ;;  %v119_v26 = vrot.slane %v1753_v2, 1  ;;  %v121_v27 = vrot.slane %v1755_v5, 1 }
  0x81   :  { %v145_v28 = vrot.slane %v1753_v2, 2  ;;  %v148_v31 = vrot.slane %v1755_v5, 2  ;;  %v173_v32 = vrot.slane %v1753_v2, 3  ;;  %v176_v56 = vrot.slane %v1755_v5, 3 }
  0x82   :  { %v72_v50 = vsel %vm71_vm0, %v70_v52, %v1765_v24  ;;  %v74_v49 = vsel %vm71_vm0, %v73_v53, %v1767_v25  ;;  %v111_v21 = vrot.slane %v1765_v24, 1  ;;  %v113_v48 = vrot.slane %v1767_v25, 1 }
  0x83   :  { %v135_v30 = vrot.slane %v1765_v24, 2  ;;  %v138_v61 = vrot.slane %v1767_v25, 2  ;;  %v77_v51 = vadd.f32 %v72_v50, %v1722_v35  ;;  %v78_v46 = vadd.f32 %v74_v49, %v1729_v39 }
  0x84   :  { %v163_v52 = vrot.slane %v1765_v24, 3  ;;  %v166_v53 = vrot.slane %v1767_v25, 3  ;;  %v112_v40 = vsel %vm71_vm0, %v1725_v37, %v111_v21  ;;  %v114_v47 = vsel %vm71_vm0, %v1727_v38, %v113_v48 }
  0x85   :  { %v137_v29 = vsel %vm71_vm0, %v136_v54, %v135_v30  ;;  %v140_v60 = vsel %vm71_vm0, %v139_v55, %v138_v61  ;;  %v191_v45 = vrot.slane %v1765_v24, 4  ;;  %v194_v50 = vrot.slane %v1767_v25, 4 }
  0x86   :  { %v213_v49 = vrot.slane %v1765_v24, 5  ;;  %v216_v36 = vrot.slane %v1767_v25, 5  ;;  %v165_v20 = vsel %vm71_vm0, %v164_v57, %v163_v52  ;;  %v168_v59 = vsel %vm71_vm0, %v167_v58, %v166_v53 }
  0x87   :  { %v241_v21 = vrot.slane %v1765_v24, 6  ;;  %v244_v48 = vrot.slane %v1767_v25, 6  ;;  %v269_v54 = vrot.slane %v1765_v24, 7  ;;  %v272_v55 = vrot.slane %v1767_v25, 7 }
  0x88   :  { %v107_v30 = vadd.f32 %v102_v22, %v77_v51  ;;  %v108_v61 = vadd.f32 %v104_v23, %v78_v46  ;;  %v215_v44 = vsel %vm71_vm0, %v214_v62, %v213_v49  ;;  %v218_v43 = vsel %vm71_vm0, %v217_v63, %v216_v36 }
  0x89   :  { %v243_v42 = vsel %vm71_vm0, %v242_v6, %v241_v21  ;;  %v246_v57 = vsel %vm71_vm0, %v245_v13, %v244_v48  ;;  %v117_v58 = vadd.f32 %v112_v40, %v1722_v35  ;;  %v120_v52 = vsel %vm71_vm0, %v1718_v33, %v119_v26 }
  0x8a   :  { %109 = vst [vmem:[#allocation2 + $0x10] sm:$0x3] %v107_v30  ;;  %v118_v24 = vadd.f32 %v114_v47, %v1729_v39  ;;  %v122_v51 = vsel %vm71_vm0, %v1720_v34, %v121_v27  ;;  %v143_v46 = vadd.f32 %v137_v29, %v1722_v35  ;;  %v147_v62 = vsel %vm71_vm0, %v146_v41, %v145_v28 }
  0x8b   :  { %110 = vst [vmem:[#allocation2] sm:$0x3] %v108_v61  ;;  %v144_v63 = vadd.f32 %v140_v60, %v1729_v39  ;;  %v2066_v6 = vrot.slane %v1720_v34, 1  ;;  %v125_v22 = vadd.f32 %v120_v52, %v117_v58  ;;  %v171_v47 = vadd.f32 %v165_v20, %v1722_v35 }
  0x8c   :  { %v126_v23 = vadd.f32 %v122_v51, %v118_v24  ;;  %v2067_v25 = vrot.slane %v1718_v33, 2  ;;  %v153_v27 = vadd.f32 %v147_v62, %v143_v46  ;;  %v172_v40 = vadd.f32 %v168_v59, %v1729_v39 }
  0x8d   :  { %v150_v13 = vsel %vm71_vm0, %v2066_v6, %v148_v31  ;;  %v2068_v41 = vrot.slane %v1720_v34, 2  ;;  %v129_v28 = vrot.slane %v125_v22, 6  ;;  %v2069_v31 = vrot.slane %v1725_v37, 3 }
  0x8e   :  { %v175_v26 = vsel %vm71_vm0, %v2067_v25, %v173_v32  ;;  %v154_v36 = vadd.f32 %v150_v13, %v144_v63  ;;  %v130_v29 = vrot.slane %v126_v23, 6  ;;  %v157_v20 = vrot.slane %v153_v27, 4  ;;  %v356_v61 = vpop.f32.mrf.mxu1 }
  0x8f   :  { %v178_v60 = vsel %vm71_vm0, %v2068_v41, %v176_v56  ;;  %v181_v53 = vadd.f32 %v175_v26, %v171_v47  ;;  %v193_v49 = vsel %vm71_vm0, %v2069_v31, %v191_v45  ;;  %v2070_v30 = vrot.slane %v1725_v37, 6  ;;  %133 = vst [vmem:[#allocation2 + $0x10] sm:$0xc] %v129_v28 }
  0x90   :  { %v158_v21 = vrot.slane %v154_v36, 4  ;;  %v182_v48 = vadd.f32 %v178_v60, %v172_v40  ;;  %v199_v32 = vadd.f32 %v193_v49, %v1722_v35  ;;  %v2071_v56 = vrot.slane %v1753_v2, 4  ;;  %134 = vst [vmem:[#allocation2] sm:$0xc] %v130_v29 }
  0x91   :  { %v271_v59 = vsel %vm71_vm0, %v2070_v30, %v269_v54  ;;  %v185_v58 = vrot.slane %v181_v53, 2  ;;  %v2072_v52 = vrot.slane %v1718_v33, 3  ;;  %v2073_v45 = vrot.slane %v1727_v38, 3  ;;  %161 = vst [vmem:[#allocation2 + $0x10] sm:$0x30] %v157_v20 }
  0x92   :  { %v186_v46 = vrot.slane %v182_v48, 2  ;;  %v2074_v37 = vrot.slane %v1755_v5, 4  ;;  %v2075_v54 = vrot.slane %v1720_v34, 3  ;;  %v221_v6 = vadd.f32 %v215_v44, %v1722_v35  ;;  %v298_v13 = vld [vmem:[#allocation2] sm:$0x3] }
  0x93   :  { %v203_v24 = vsel %vm71_vm0, %v2072_v52, %v2071_v56  ;;  %v196_v51 = vsel %vm71_vm0, %v2073_v45, %v194_v50  ;;  %v2076_v23 = vrot.slane %v1753_v2, 5  ;;  %v2077_v47 = vrot.slane %v1718_v33, 4  ;;  %162 = vst [vmem:[#allocation2] sm:$0x30] %v158_v21 }
  0x94   :  { %v200_v62 = vadd.f32 %v196_v51, %v1729_v39  ;;  %v206_v63 = vsel %vm71_vm0, %v2075_v54, %v2074_v37  ;;  %v209_v22 = vadd.f32 %v203_v24, %v199_v32  ;;  %v222_v25 = vadd.f32 %v218_v43, %v1729_v39  ;;  %189 = vst [vmem:[#allocation2 + $0x10] sm:$0xc0] %v185_v58 }
  0x95   :  { %v225_v50 = vsel %vm71_vm0, %v2077_v47, %v2076_v23  ;;  %v2078_v26 = vrot.slane %v1755_v5, 5  ;;  %v2079_v27 = vrot.slane %v1720_v34, 4  ;;  %v357_v40 = vadd.f32 %v356_v61, %v298_v13  ;;  %190 = vst [vmem:[#allocation2] sm:$0xc0] %v186_v46 }
  0x96   :  { %v210_v44 = vadd.f32 %v206_v63, %v200_v62  ;;  %v231_v41 = vadd.f32 %v225_v50, %v221_v6  ;;  %v249_v60 = vadd.f32 %v243_v42, %v1722_v35  ;;  %v2080_v28 = vrot.slane %v1727_v38, 6  ;;  %211 = vst [vmem:[#allocation2 + $0x18] sm:$0x3] %v209_v22 }
  0x97   :  { %v228_v36 = vsel %vm71_vm0, %v2079_v27, %v2078_v26  ;;  %v2081_v43 = vrot.slane %v1753_v2, 6  ;;  %v2082_v31 = vrot.slane %v1718_v33, 5  ;;  %v250_v20 = vadd.f32 %v246_v57, %v1729_v39 }
  0x98   :  { %v274_v29 = vsel %vm71_vm0, %v2080_v28, %v272_v55  ;;  %v232_v53 = vadd.f32 %v228_v36, %v222_v25  ;;  %v1317_v48 = vmul.f32 -1.442695, %v357_v40  ;;  %v235_v21 = vrot.slane %v231_v41, 6  ;;  %212 = vst [vmem:[#allocation2 + $0x8] sm:$0x3] %v210_v44  ;;  %v336_v36 = vpop.f32.mrf.mxu0 }
  0x99   :  { %v253_v49 = vsel %vm71_vm0, %v2082_v31, %v2081_v43  ;;  %v2083_v42 = vrot.slane %v1755_v5, 6  ;;  %v2084_v38 = vrot.slane %v1720_v34, 5  ;;  %v283_v30 = vrot.slane %v1720_v34, 6  ;;  %v297_v40 = vld [vmem:[#allocation2 + $0x10] sm:$0x3] }
  0x9a   :  { %v259_v32 = vadd.f32 %v253_v49, %v249_v60  ;;  %v236_v61 = vrot.slane %v232_v53, 6  ;;  %v277_v56 = vadd.f32 %v271_v59, %v1722_v35  ;;  %1369 = vpow2.f32 %v1317_v48  ;;  %239 = vst [vmem:[#allocation2 + $0x18] sm:$0xc] %v235_v21 }
  0x9b   :  { %v256_v55 = vsel %vm71_vm0, %v2084_v38, %v2083_v42  ;;  %v2085_v52 = vrot.slane %v1753_v2, 7  ;;  %v2086_v24 = vrot.slane %v1718_v33, 6  ;;  %v278_v51 = vadd.f32 %v274_v29, %v1729_v39 }
  0x9c   :  { %v260_v58 = vadd.f32 %v256_v55, %v250_v20  ;;  %v263_v57 = vrot.slane %v259_v32, 4  ;;  %v2087_v34 = vrot.slane %v1755_v5, 7  ;;  %240 = vst [vmem:[#allocation2 + $0x8] sm:$0xc] %v236_v61  ;;  %v337_v44 = vadd.f32 %v336_v36, %v297_v40 }
  0x9d   :  { %v281_v45 = vsel %vm71_vm0, %v2086_v24, %v2085_v52  ;;  %v417_v24 = vld [vmem:[#allocation2] sm:$0xc] }
  0x9e   :  { %v264_v46 = vrot.slane %v260_v58, 4  ;;  %v287_v62 = vadd.f32 %v281_v45, %v277_v56  ;;  %v284_v37 = vsel %vm71_vm0, %v283_v30, %v2087_v34  ;;  %267 = vst [vmem:[#allocation2 + $0x18] sm:$0x30] %v263_v57  ;;  %v1316_v41 = vmul.f32 -1.442695, %v337_v44 }
  0x9f   :  { %v288_v35 = vadd.f32 %v284_v37, %v278_v51  ;;  %v421_v45 = vrot.slane %v417_v24, 2 }
  0xa0   :  { %v291_v59 = vrot.slane %v287_v62, 2  ;;  %268 = vst [vmem:[#allocation2 + $0x8] sm:$0x30] %v264_v46  ;;  %v1370_v2 = vpop.eup %1369 }
  0xa1   :  { %v292_v54 = vrot.slane %v288_v35, 2  ;;  %v366_v33 = vadd.f32 1.0, %v1370_v2 }
  0xa2   :  { %295 = vst [vmem:[#allocation2 + $0x18] sm:$0xc0] %v291_v59 }
  0xa3   :  { %296 = vst [vmem:[#allocation2 + $0x8] sm:$0xc0] %v292_v54  ;;  %1371 = vrcp.f32 %v366_v33  ;;  %v393_v13 = vand.u32 2147483648, %v366_v33  ;;  %v391_v5 = vand.u32 2147483647, %v366_v33  ;;  %vm387_vm2 = vweird.f32 %v366_v33 }
  0xa4   :  { %1373 = vpow2.f32 %v1316_v41 }
  0xa5   :  { %v394_v47 = vor.u32 1.1754944e-38, %v393_v13  ;;  %vm392_vm4 = vcmp.eq.f32.partialorder %v391_v5, 8.507059e+37 }
  0xa9   :  { %v1372_v63 = vpop.eup %1371 }
  0xaa   :  { %v383_v39 = vmul.f32 %v1372_v63, %v366_v33  ;;  %vm388_vm1 = vweird.f32 %v1372_v63  ;;  %v1374_v60 = vpop.eup %1373 }
  0xab   :  { %vm389_vm3 = vmor %vm387_vm2, %vm388_vm1  ;;  %v365_v28 = vadd.f32 1.0, %v1374_v60 }
  0xac   :  { %v384_v6 = vsub.f32 1.0, %v383_v39 }
  0xad   :  { %1375 = vrcp.f32 %v365_v28  ;;  %v378_v20 = vand.u32 2147483648, %v365_v28  ;;  %vm372_vm6 = vweird.f32 %v365_v28  ;;  %v376_v48 = vand.u32 2147483647, %v365_v28 }
  0xae   :  { %v385_v22 = vmul.f32 %v1372_v63, %v384_v6 }
  0xaf   :  { %v379_v32 = vor.u32 1.1754944e-38, %v378_v20  ;;  %vm377_vm8 = vcmp.eq.f32.partialorder %v376_v48, 8.507059e+37 }
  0xb0   :  { %v386_v23 = vadd.f32 %v1372_v63, %v385_v22 }
  0xb2   :  { %v390_v50 = vsel %vm389_vm3, %v1372_v63, %v386_v23 }
  0xb3   :  { %v395_v25 = vsel %vm392_vm4, %v394_v47, %v390_v50  ;;  %v1376_v29 = vpop.eup %1375  ;;  %v416_v47 = vld [vmem:[#allocation2 + $0x10] sm:$0xc] }
  0xb4   :  { %v397_v26 = vmul.f32 2.0, %v395_v25  ;;  %v368_v53 = vmul.f32 %v1376_v29, %v365_v28  ;;  %vm373_vm5 = vweird.f32 %v1376_v29 }
  0xb5   :  { %vm374_vm7 = vmor %vm372_vm6, %vm373_vm5 }
  0xb6   :  { %v1318_v27 = vadd.f32 -1.0, %v397_v26  ;;  %v369_v43 = vsub.f32 1.0, %v368_v53 }
  0xb8   :  { %401 = vrot.lane.b32.xlu2 %v1318_v27, %s1486_s1  ;;  %v370_v31 = vmul.f32 %v1376_v29, %v369_v43 }
  0xba   :  { %v371_v49 = vadd.f32 %v1376_v29, %v370_v31 }
  0xbc   :  { %v375_v21 = vsel %vm374_vm7, %v1376_v29, %v371_v49 }
  0xbd   :  { %v380_v38 = vsel %vm377_vm8, %v379_v32, %v375_v21 }
  0xbe   :  { %v399_v30 = vmul.f32 0.0, %v380_v38 }
 0x112   :  { %v402_v42 = vpop.permute.xlu2 %401 }
 0x113   :  { %v404_v55 = vmul.f32 %v402_v42, %v380_v38 }
 0x115   :  { %406 = vrot.lane.b32.xlu2 %v404_v55, %s1486_s1 }
 0x16f   :  { %v407_v61 = vpop.permute.xlu2 %406 }
 0x170   :  { %v1898_v58 = vadd.f32 %v407_v61, %v399_v30 }
 0x172   :  { %1377 = vtanh.f32 %v1898_v58 }
 0x178   :  { %v1378_v56 = vpop.eup %1377 }
 0x179   :  { %412 = vrot.lane.b32.xlu0 %v1378_v56, %s1486_s1 }
 0x1eb   :  { %v413_v57 = vpop.permute.xlu0 %412 }
 0x1ec   :  { %v415_v52 = vmul.f32 %v413_v57, %v395_v25  ;;  %v420_v25 = vrot.slane %v416_v47, 2 }
 0x1ee   :  { %1319 = vmatmul.msk.f32.vlgmr.msra.gmra.mxu2 %vm315_vm9, %v415_v52  ;;  %1320 = vmatmul.msk.f32.vlgmr.msra.gmra.mxu3 %vm315_vm9, %v415_v52 }
 0x1ef   :  { %861 = vmatpush.msra.mxu2 %v1547_v0  ;;  %881 = vmatpush.msra.mxu3 %v1552_v1 }
 0x1f1   :  { %862 = vmatpush.msra.mxu2 %v1562_v3  ;;  %882 = vmatpush.msra.mxu3 %v1567_v4 }
 0x1f3   :  { %863 = vmatpush.msra.mxu2 %v1573_v7  ;;  %883 = vmatpush.msra.mxu3 %v1578_v8 }
 0x1f5   :  { %864 = vmatpush.msra.mxu2 %v1585_v9  ;;  %884 = vmatpush.msra.mxu3 %v1590_v10 }
 0x1f7   :  { %865 = vmatpush.msra.mxu2 %v1599_v11  ;;  %885 = vmatpush.msra.mxu3 %v1604_v12 }
 0x1f9   :  { %866 = vmatpush.msra.mxu2 %v1616_v14  ;;  %886 = vmatpush.msra.mxu3 %v1621_v15 }
 0x1fb   :  { %867 = vmatpush.msra.mxu2 %v1630_v16  ;;  %887 = vmatpush.msra.mxu3 %v1635_v17 }
 0x1fd   :  { %868 = vmatpush.msra.mxu2 %v1642_v18  ;;  %888 = vmatpush.msra.mxu3 %v1647_v19 }
 0x271   :  { %v464_v51 = vpop.f32.mrf.mxu3  ;;  %v444_v50 = vpop.f32.mrf.mxu2 }
 0x272   :  { %v465_v46 = vadd.f32 %v464_v51, %v421_v45  ;;  %v445_v26 = vadd.f32 %v444_v50, %v420_v25 }
 0x274   :  { %v1322_v62 = vmul.f32 -1.442695, %v465_v46  ;;  %v1321_v27 = vmul.f32 -1.442695, %v445_v26 }
 0x276   :  { %1379 = vpow2.f32 %v1322_v62 }
 0x27c   :  { %v1380_v34 = vpop.eup %1379 }
 0x27d   :  { %v474_v37 = vadd.f32 1.0, %v1380_v34 }
 0x27f   :  { %1381 = vrcp.f32 %v474_v37  ;;  %v501_v2 = vand.u32 2147483648, %v474_v37  ;;  %v499_v63 = vand.u32 2147483647, %v474_v37  ;;  %vm495_vm11 = vweird.f32 %v474_v37 }
 0x280   :  { %1383 = vpow2.f32 %v1321_v27 }
 0x281   :  { %v502_v6 = vor.u32 1.1754944e-38, %v501_v2  ;;  %vm500_vm13 = vcmp.eq.f32.partialorder %v499_v63, 8.507059e+37 }
 0x285   :  { %v1382_v35 = vpop.eup %1381 }
 0x286   :  { %v491_v59 = vmul.f32 %v1382_v35, %v474_v37  ;;  %vm496_vm10 = vweird.f32 %v1382_v35  ;;  %v1384_v36 = vpop.eup %1383 }
 0x287   :  { %vm497_vm12 = vmor %vm495_vm11, %vm496_vm10  ;;  %v473_v40 = vadd.f32 1.0, %v1384_v36 }
 0x288   :  { %v492_v54 = vsub.f32 1.0, %v491_v59 }
 0x289   :  { %1385 = vrcp.f32 %v473_v40  ;;  %v486_v53 = vand.u32 2147483648, %v473_v40  ;;  %vm480_vm15 = vweird.f32 %v473_v40  ;;  %v484_v43 = vand.u32 2147483647, %v473_v40 }
 0x28a   :  { %v493_v33 = vmul.f32 %v1382_v35, %v492_v54 }
 0x28b   :  { %v487_v49 = vor.u32 1.1754944e-38, %v486_v53  ;;  %vm485_vm1 = vcmp.eq.f32.partialorder %v484_v43, 8.507059e+37 }
 0x28c   :  { %v494_v39 = vadd.f32 %v1382_v35, %v493_v33 }
 0x28e   :  { %v498_v13 = vsel %vm497_vm12, %v1382_v35, %v494_v39 }
 0x28f   :  { %v503_v22 = vsel %vm500_vm13, %v502_v6, %v498_v13  ;;  %v1386_v44 = vpop.eup %1385  ;;  %v524_v13 = vld [vmem:[#allocation2 + $0x10] sm:$0x30] }
 0x290   :  { %v505_v5 = vmul.f32 2.0, %v503_v22  ;;  %v476_v41 = vmul.f32 %v1386_v44, %v473_v40  ;;  %vm481_vm14 = vweird.f32 %v1386_v44 }
 0x291   :  { %vm482_vm0 = vmor %vm480_vm15, %vm481_vm14 }
 0x292   :  { %v1323_v23 = vadd.f32 -1.0, %v505_v5  ;;  %v477_v60 = vsub.f32 1.0, %v476_v41  ;;  %v528_v5 = vrot.slane %v524_v13, 4 }
 0x294   :  { %509 = vrot.lane.b32.xlu1 %v1323_v23, %s1486_s1  ;;  %v478_v28 = vmul.f32 %v1386_v44, %v477_v60 }
 0x296   :  { %v479_v29 = vadd.f32 %v1386_v44, %v478_v28 }
 0x298   :  { %v483_v31 = vsel %vm482_vm0, %v1386_v44, %v479_v29 }
 0x299   :  { %v488_v48 = vsel %vm485_vm1, %v487_v49, %v483_v31 }
 0x29a   :  { %v507_v32 = vmul.f32 %v488_v48, %v1898_v58  ;;  %v525_v58 = vld [vmem:[#allocation2] sm:$0x30] }
 0x29b   :  { %v529_v56 = vrot.slane %v525_v58, 4 }
 0x306   :  { %v510_v20 = vpop.permute.xlu1 %509 }
 0x307   :  { %v512_v21 = vmul.f32 %v510_v20, %v488_v48 }
 0x309   :  { %514 = vrot.lane.b32.xlu2 %v512_v21, %s1486_s1 }
 0x363   :  { %v515_v42 = vpop.permute.xlu2 %514 }
 0x364   :  { %v1923_v38 = vadd.f32 %v515_v42, %v507_v32 }
 0x366   :  { %1387 = vtanh.f32 %v1923_v38 }
 0x36c   :  { %v1388_v55 = vpop.eup %1387 }
 0x36d   :  { %520 = vrot.lane.b32.xlu0 %v1388_v55, %s1486_s1 }
 0x3df   :  { %v521_v30 = vpop.permute.xlu0 %520 }
 0x3e0   :  { %v523_v61 = vmul.f32 %v521_v30, %v503_v22 }
 0x3e2   :  { %1324 = vmatmul.msk.f32.vlgmr.msrb.gmra.mxu0 %vm315_vm9, %v523_v61  ;;  %1325 = vmatmul.msk.f32.vlgmr.msrb.gmra.mxu1 %vm315_vm9, %v523_v61  ;;  %v632_v61 = vld [vmem:[#allocation2 + $0x10] sm:$0xc0] }
 0x3e3   :  { %969 = vmatpush.msrb.mxu0 %v1547_v0  ;;  %989 = vmatpush.msrb.mxu1 %v1552_v1 }
 0x3e5   :  { %970 = vmatpush.msrb.mxu0 %v1562_v3  ;;  %990 = vmatpush.msrb.mxu1 %v1567_v4 }
 0x3e7   :  { %971 = vmatpush.msrb.mxu0 %v1573_v7  ;;  %991 = vmatpush.msrb.mxu1 %v1578_v8 }
 0x3e9   :  { %972 = vmatpush.msrb.mxu0 %v1585_v9  ;;  %992 = vmatpush.msrb.mxu1 %v1590_v10 }
 0x3eb   :  { %973 = vmatpush.msrb.mxu0 %v1599_v11  ;;  %993 = vmatpush.msrb.mxu1 %v1604_v12 }
 0x3ed   :  { %974 = vmatpush.msrb.mxu0 %v1616_v14  ;;  %994 = vmatpush.msrb.mxu1 %v1621_v15 }
 0x3ef   :  { %975 = vmatpush.msrb.mxu0 %v1630_v16  ;;  %995 = vmatpush.msrb.mxu1 %v1635_v17 }
 0x3f1   :  { %976 = vmatpush.msrb.mxu0 %v1642_v18  ;;  %996 = vmatpush.msrb.mxu1 %v1647_v19 }
 0x45f   :  { %v572_v57 = vpop.f32.mrf.mxu1  ;;  %v552_v22 = vpop.f32.mrf.mxu0 }
 0x460   :  { %v573_v52 = vadd.f32 %v572_v57, %v529_v56  ;;  %v553_v23 = vadd.f32 %v552_v22, %v528_v5  ;;  %v636_v56 = vrot.slane %v632_v61, 6 }
 0x462   :  { %v1327_v24 = vmul.f32 -1.442695, %v573_v52  ;;  %v1326_v47 = vmul.f32 -1.442695, %v553_v23 }
 0x464   :  { %1389 = vpow2.f32 %v1327_v24 }
 0x46a   :  { %v1390_v45 = vpop.eup %1389 }
 0x46b   :  { %v582_v51 = vadd.f32 1.0, %v1390_v45 }
 0x46d   :  { %1391 = vrcp.f32 %v582_v51  ;;  %v609_v37 = vand.u32 2147483648, %v582_v51  ;;  %v607_v59 = vand.u32 2147483647, %v582_v51  ;;  %vm603_vm3 = vweird.f32 %v582_v51 }
 0x46e   :  { %1393 = vpow2.f32 %v1326_v47 }
 0x46f   :  { %v610_v2 = vor.u32 1.1754944e-38, %v609_v37  ;;  %vm608_vm5 = vcmp.eq.f32.partialorder %v607_v59, 8.507059e+37 }
 0x473   :  { %v1392_v46 = vpop.eup %1391 }
 0x474   :  { %v599_v62 = vmul.f32 %v1392_v46, %v582_v51  ;;  %vm604_vm2 = vweird.f32 %v1392_v46  ;;  %v1394_v50 = vpop.eup %1393 }
 0x475   :  { %vm605_vm4 = vmor %vm603_vm3, %vm604_vm2  ;;  %v581_v25 = vadd.f32 1.0, %v1394_v50  ;;  %v741_v50 = vld [vmem:[#allocation2 + $0x8] sm:$0x3] }
 0x476   :  { %v600_v34 = vsub.f32 1.0, %v599_v62 }
 0x477   :  { %1395 = vrcp.f32 %v581_v25  ;;  %v594_v41 = vand.u32 2147483648, %v581_v25  ;;  %vm588_vm7 = vweird.f32 %v581_v25  ;;  %v592_v60 = vand.u32 2147483647, %v581_v25 }
 0x478   :  { %v601_v35 = vmul.f32 %v1392_v46, %v600_v34 }
 0x479   :  { %v595_v29 = vor.u32 1.1754944e-38, %v594_v41  ;;  %vm593_vm10 = vcmp.eq.f32.partialorder %v592_v60, 8.507059e+37 }
 0x47a   :  { %v602_v54 = vadd.f32 %v1392_v46, %v601_v35 }
 0x47c   :  { %v606_v33 = vsel %vm605_vm4, %v1392_v46, %v602_v54 }
 0x47d   :  { %v611_v63 = vsel %vm608_vm5, %v610_v2, %v606_v33  ;;  %v1396_v26 = vpop.eup %1395 }
 0x47e   :  { %v613_v39 = vmul.f32 2.0, %v611_v63  ;;  %v584_v27 = vmul.f32 %v1396_v26, %v581_v25  ;;  %vm589_vm6 = vweird.f32 %v1396_v26 }
 0x47f   :  { %vm590_vm8 = vmor %vm588_vm7, %vm589_vm6 }
 0x480   :  { %v1328_v6 = vadd.f32 -1.0, %v613_v39  ;;  %v585_v36 = vsub.f32 1.0, %v584_v27 }
 0x482   :  { %617 = vrot.lane.b32.xlu1 %v1328_v6, %s1486_s1  ;;  %v586_v40 = vmul.f32 %v1396_v26, %v585_v36 }
 0x484   :  { %v587_v44 = vadd.f32 %v1396_v26, %v586_v40 }
 0x486   :  { %v591_v28 = vsel %vm590_vm8, %v1396_v26, %v587_v44 }
 0x487   :  { %v596_v43 = vsel %vm593_vm10, %v595_v29, %v591_v28 }
 0x488   :  { %v615_v49 = vmul.f32 %v596_v43, %v1923_v38 }
 0x4f4   :  { %v618_v53 = vpop.permute.xlu1 %617 }
 0x4f5   :  { %v620_v31 = vmul.f32 %v618_v53, %v596_v43 }
 0x4f7   :  { %622 = vrot.lane.b32.xlu2 %v620_v31, %s1486_s1 }
 0x551   :  { %v623_v20 = vpop.permute.xlu2 %622 }
 0x552   :  { %v1948_v48 = vadd.f32 %v623_v20, %v615_v49 }
 0x554   :  { %1397 = vtanh.f32 %v1948_v48 }
 0x55a   :  { %v1398_v21 = vpop.eup %1397 }
 0x55b   :  { %628 = vrot.lane.b32.xlu0 %v1398_v21, %s1486_s1 }
 0x5cd   :  { %v629_v32 = vpop.permute.xlu0 %628 }
 0x5ce   :  { %v631_v42 = vmul.f32 %v629_v32, %v611_v63 }
 0x5d0   :  { %1329 = vmatmul.msk.f32.vlgmr.msrb.gmra.mxu2 %vm315_vm9, %v631_v42  ;;  %1330 = vmatmul.msk.f32.vlgmr.msrb.gmra.mxu3 %vm315_vm9, %v631_v42  ;;  %v740_v42 = vld [vmem:[#allocation2 + $0x18] sm:$0x3] }
 0x5d1   :  { %1077 = vmatpush.msrb.mxu2 %v1547_v0  ;;  %1097 = vmatpush.msrb.mxu3 %v1552_v1  ;;  %v633_v0 = vld [vmem:[#allocation2] sm:$0xc0] }
 0x5d2   :  { %v637_v1 = vrot.slane %v633_v0, 6 }
 0x5d3   :  { %1078 = vmatpush.msrb.mxu2 %v1562_v3  ;;  %1098 = vmatpush.msrb.mxu3 %v1567_v4 }
 0x5d5   :  { %1079 = vmatpush.msrb.mxu2 %v1573_v7  ;;  %1099 = vmatpush.msrb.mxu3 %v1578_v8 }
 0x5d7   :  { %1080 = vmatpush.msrb.mxu2 %v1585_v9  ;;  %1100 = vmatpush.msrb.mxu3 %v1590_v10 }
 0x5d9   :  { %1081 = vmatpush.msrb.mxu2 %v1599_v11  ;;  %1101 = vmatpush.msrb.mxu3 %v1604_v12 }
 0x5db   :  { %1082 = vmatpush.msrb.mxu2 %v1616_v14  ;;  %1102 = vmatpush.msrb.mxu3 %v1621_v15 }
 0x5dd   :  { %1083 = vmatpush.msrb.mxu2 %v1630_v16  ;;  %1103 = vmatpush.msrb.mxu3 %v1635_v17 }
 0x5df   :  { %1084 = vmatpush.msrb.mxu2 %v1642_v18  ;;  %1104 = vmatpush.msrb.mxu3 %v1647_v19 }
 0x653   :  { %v680_v3 = vpop.f32.mrf.mxu3  ;;  %v660_v58 = vpop.f32.mrf.mxu2 }
 0x654   :  { %v681_v4 = vadd.f32 %v680_v3, %v637_v1  ;;  %v661_v57 = vadd.f32 %v660_v58, %v636_v56 }
 0x656   :  { %v1332_v7 = vmul.f32 -1.442695, %v681_v4  ;;  %v1331_v52 = vmul.f32 -1.442695, %v661_v57  ;;  %v843_v57 = vld [vmem:[#allocation2 + $0x8] sm:$0xc] }
 0x658   :  { %1399 = vpow2.f32 %v1332_v7 }
 0x65e   :  { %v1400_v8 = vpop.eup %1399 }
 0x65f   :  { %v690_v9 = vadd.f32 1.0, %v1400_v8 }
 0x661   :  { %1401 = vrcp.f32 %v690_v9  ;;  %v717_v14 = vand.u32 2147483648, %v690_v9  ;;  %v715_v16 = vand.u32 2147483647, %v690_v9  ;;  %vm711_vm12 = vweird.f32 %v690_v9 }
 0x662   :  { %1403 = vpow2.f32 %v1331_v52  ;;  %v847_v52 = vrot.slane %v843_v57, 2 }
 0x663   :  { %v718_v18 = vor.u32 1.1754944e-38, %v717_v14  ;;  %vm716_vm14 = vcmp.eq.f32.partialorder %v715_v16, 8.507059e+37 }
 0x667   :  { %v1402_v10 = vpop.eup %1401 }
 0x668   :  { %v707_v11 = vmul.f32 %v1402_v10, %v690_v9  ;;  %vm712_vm11 = vweird.f32 %v1402_v10  ;;  %v1404_v24 = vpop.eup %1403 }
 0x669   :  { %vm713_vm13 = vmor %vm711_vm12, %vm712_vm11  ;;  %v689_v45 = vadd.f32 1.0, %v1404_v24 }
 0x66a   :  { %v708_v12 = vsub.f32 1.0, %v707_v11 }
 0x66b   :  { %1405 = vrcp.f32 %v689_v45  ;;  %v702_v35 = vand.u32 2147483648, %v689_v45  ;;  %vm696_vm0 = vweird.f32 %v689_v45  ;;  %v700_v59 = vand.u32 2147483647, %v689_v45 }
 0x66c   :  { %v709_v15 = vmul.f32 %v1402_v10, %v708_v12 }
 0x66d   :  { %v703_v2 = vor.u32 1.1754944e-38, %v702_v35  ;;  %vm701_vm2 = vcmp.eq.f32.partialorder %v700_v59, 8.507059e+37 }
 0x66e   :  { %v710_v17 = vadd.f32 %v1402_v10, %v709_v15 }
 0x670   :  { %v714_v19 = vsel %vm713_vm13, %v1402_v10, %v710_v17 }
 0x671   :  { %v719_v38 = vsel %vm716_vm14, %v718_v18, %v714_v19  ;;  %v1406_v51 = vpop.eup %1405 }
 0x672   :  { %v721_v55 = vmul.f32 2.0, %v719_v38  ;;  %v692_v46 = vmul.f32 %v1406_v51, %v689_v45  ;;  %vm697_vm15 = vweird.f32 %v1406_v51 }
 0x673   :  { %vm698_vm1 = vmor %vm696_vm0, %vm697_vm15 }
 0x674   :  { %v1333_v30 = vadd.f32 -1.0, %v721_v55  ;;  %v693_v62 = vsub.f32 1.0, %v692_v46 }
 0x676   :  { %725 = vrot.lane.b32.xlu1 %v1333_v30, %s1486_s1  ;;  %v694_v34 = vmul.f32 %v1406_v51, %v693_v62 }
 0x678   :  { %v695_v37 = vadd.f32 %v1406_v51, %v694_v34 }
 0x67a   :  { %v699_v54 = vsel %vm698_vm1, %v1406_v51, %v695_v37 }
 0x67b   :  { %v704_v63 = vsel %vm701_vm2, %v703_v2, %v699_v54 }
 0x67c   :  { %v723_v6 = vmul.f32 %v704_v63, %v1948_v48 }
 0x6e8   :  { %v726_v33 = vpop.permute.xlu1 %725 }
 0x6e9   :  { %v728_v39 = vmul.f32 %v726_v33, %v704_v63 }
 0x6eb   :  { %730 = vrot.lane.b32.xlu2 %v728_v39, %s1486_s1 }
 0x745   :  { %v731_v13 = vpop.permute.xlu2 %730 }
 0x746   :  { %v733_v22 = vadd.f32 %v731_v13, %v723_v6 }
 0x748   :  { %1407 = vtanh.f32 %v733_v22 }
 0x74e   :  { %v1408_v5 = vpop.eup %1407 }
 0x74f   :  { %736 = vrot.lane.b32.xlu0 %v1408_v5, %s1486_s1  ;;  %v842_v5 = vld [vmem:[#allocation2 + $0x18] sm:$0xc] }
 0x7c1   :  { %v737_v23 = vpop.permute.xlu0 %736 }
 0x7c2   :  { %v739_v47 = vmul.f32 %v737_v23, %v719_v38 }
 0x7c4   :  { %1334 = vmatmul.msk.f32.vlgmr.msra.gmra.mxu0 %vm315_vm9, %v739_v47  ;;  %1335 = vmatmul.msk.f32.vlgmr.msra.gmra.mxu1 %vm315_vm9, %v739_v47  ;;  %v846_v47 = vrot.slane %v842_v5, 2 }
 0x841   :  { %v782_v25 = vpop.f32.mrf.mxu1  ;;  %v762_v32 = vpop.f32.mrf.mxu0 }
 0x842   :  { %v783_v26 = vadd.f32 %v782_v25, %v741_v50  ;;  %v763_v0 = vadd.f32 %v762_v32, %v740_v42 }
 0x844   :  { %v1337_v27 = vmul.f32 -1.442695, %v783_v26  ;;  %v1336_v1 = vmul.f32 -1.442695, %v763_v0 }
 0x846   :  { %1409 = vpow2.f32 %v1337_v27 }
 0x84c   :  { %v1410_v36 = vpop.eup %1409 }
 0x84d   :  { %v792_v40 = vadd.f32 1.0, %v1410_v36 }
 0x84f   :  { %1411 = vrcp.f32 %v792_v40  ;;  %v819_v28 = vand.u32 2147483648, %v792_v40  ;;  %v817_v53 = vand.u32 2147483647, %v792_v40  ;;  %vm813_vm4 = vweird.f32 %v792_v40 }
 0x850   :  { %1413 = vpow2.f32 %v1336_v1 }
 0x851   :  { %v820_v31 = vor.u32 1.1754944e-38, %v819_v28  ;;  %vm818_vm6 = vcmp.eq.f32.partialorder %v817_v53, 8.507059e+37 }
 0x855   :  { %v1412_v44 = vpop.eup %1411 }
 0x856   :  { %v809_v41 = vmul.f32 %v1412_v44, %v792_v40  ;;  %vm814_vm3 = vweird.f32 %v1412_v44  ;;  %v1414_v3 = vpop.eup %1413 }
 0x857   :  { %vm815_vm5 = vmor %vm813_vm4, %vm814_vm3  ;;  %v791_v4 = vadd.f32 1.0, %v1414_v3  ;;  %v951_v3 = vld [vmem:[#allocation2 + $0x8] sm:$0x30] }
 0x858   :  { %v810_v60 = vsub.f32 1.0, %v809_v41 }
 0x859   :  { %1415 = vrcp.f32 %v791_v4  ;;  %v804_v12 = vand.u32 2147483648, %v791_v4  ;;  %vm798_vm8 = vweird.f32 %v791_v4  ;;  %v802_v14 = vand.u32 2147483647, %v791_v4 }
 0x85a   :  { %v811_v29 = vmul.f32 %v1412_v44, %v810_v60 }
 0x85b   :  { %v805_v16 = vor.u32 1.1754944e-38, %v804_v12  ;;  %vm803_vm11 = vcmp.eq.f32.partialorder %v802_v14, 8.507059e+37 }
 0x85c   :  { %v812_v43 = vadd.f32 %v1412_v44, %v811_v29 }
 0x85e   :  { %v816_v49 = vsel %vm815_vm5, %v1412_v44, %v812_v43 }
 0x85f   :  { %v821_v20 = vsel %vm818_vm6, %v820_v31, %v816_v49  ;;  %v1416_v7 = vpop.eup %1415 }
 0x860   :  { %v823_v48 = vmul.f32 2.0, %v821_v20  ;;  %v794_v8 = vmul.f32 %v1416_v7, %v791_v4  ;;  %vm799_vm7 = vweird.f32 %v1416_v7  ;;  %v955_v4 = vrot.slane %v951_v3, 4 }
 0x861   :  { %vm800_vm10 = vmor %vm798_vm8, %vm799_vm7 }
 0x862   :  { %v1338_v21 = vadd.f32 -1.0, %v823_v48  ;;  %v795_v9 = vsub.f32 1.0, %v794_v8 }
 0x864   :  { %827 = vrot.lane.b32.xlu1 %v1338_v21, %s1486_s1  ;;  %v796_v10 = vmul.f32 %v1416_v7, %v795_v9 }
 0x866   :  { %v797_v11 = vadd.f32 %v1416_v7, %v796_v10 }
 0x868   :  { %v801_v15 = vsel %vm800_vm10, %v1416_v7, %v797_v11 }
 0x869   :  { %v806_v18 = vsel %vm803_vm11, %v805_v16, %v801_v15 }
 0x86a   :  { %v825_v38 = vmul.f32 %v806_v18, %v733_v22 }
 0x8d6   :  { %v828_v17 = vpop.permute.xlu1 %827 }
 0x8d7   :  { %v830_v19 = vmul.f32 %v828_v17, %v806_v18 }
 0x8d9   :  { %832 = vrot.lane.b32.xlu2 %v830_v19, %s1486_s1 }
 0x933   :  { %v833_v55 = vpop.permute.xlu2 %832 }
 0x934   :  { %v835_v30 = vadd.f32 %v833_v55, %v825_v38 }
 0x936   :  { %1417 = vtanh.f32 %v835_v30 }
 0x93c   :  { %v1418_v61 = vpop.eup %1417 }
 0x93d   :  { %838 = vrot.lane.b32.xlu0 %v1418_v61, %s1486_s1 }
 0x9af   :  { %v839_v58 = vpop.permute.xlu0 %838 }
 0x9b0   :  { %v841_v56 = vmul.f32 %v839_v58, %v821_v20 }
 0x9b2   :  { %1339 = vmatmul.msk.f32.vlgmr.msra.gmra.mxu2 %vm315_vm9, %v841_v56  ;;  %1340 = vmatmul.msk.f32.vlgmr.msra.gmra.mxu3 %vm315_vm9, %v841_v56  ;;  %v950_v56 = vld [vmem:[#allocation2 + $0x18] sm:$0x30] }
 0xa35   :  { %v890_v24 = vpop.f32.mrf.mxu3  ;;  %v870_v23 = vpop.f32.mrf.mxu2 }
 0xa36   :  { %v891_v45 = vadd.f32 %v890_v24, %v847_v52  ;;  %v871_v50 = vadd.f32 %v870_v23, %v846_v47  ;;  %v954_v52 = vrot.slane %v950_v56, 4  ;;  %v1172_v56 = vld [vmem:[%s2059_s4 + $0x30] sm:$0xff] }
 0xa38   :  { %v1342_v51 = vmul.f32 -1.442695, %v891_v45  ;;  %v1341_v25 = vmul.f32 -1.442695, %v871_v50 }
 0xa3a   :  { %1419 = vpow2.f32 %v1342_v51 }
 0xa40   :  { %v1420_v46 = vpop.eup %1419 }
 0xa41   :  { %v900_v62 = vadd.f32 1.0, %v1420_v46 }
 0xa43   :  { %1421 = vrcp.f32 %v900_v62  ;;  %v927_v59 = vand.u32 2147483648, %v900_v62  ;;  %v925_v2 = vand.u32 2147483647, %v900_v62  ;;  %vm921_vm13 = vweird.f32 %v900_v62 }
 0xa44   :  { %1423 = vpow2.f32 %v1341_v25 }
 0xa45   :  { %v928_v63 = vor.u32 1.1754944e-38, %v927_v59  ;;  %vm926_vm15 = vcmp.eq.f32.partialorder %v925_v2, 8.507059e+37 }
 0xa49   :  { %v1422_v34 = vpop.eup %1421 }
 0xa4a   :  { %v917_v37 = vmul.f32 %v1422_v34, %v900_v62  ;;  %vm922_vm12 = vweird.f32 %v1422_v34  ;;  %v1424_v26 = vpop.eup %1423 }
 0xa4b   :  { %vm923_vm14 = vmor %vm921_vm13, %vm922_vm12  ;;  %v899_v27 = vadd.f32 1.0, %v1424_v26  ;;  %v1059_v26 = vld [vmem:[#allocation2 + $0x8] sm:$0xc0] }
 0xa4c   :  { %v918_v35 = vsub.f32 1.0, %v917_v37 }
 0xa4d   :  { %1425 = vrcp.f32 %v899_v27  ;;  %v912_v28 = vand.u32 2147483648, %v899_v27  ;;  %vm906_vm1 = vweird.f32 %v899_v27  ;;  %v910_v29 = vand.u32 2147483647, %v899_v27 }
 0xa4e   :  { %v919_v54 = vmul.f32 %v1422_v34, %v918_v35 }
 0xa4f   :  { %v913_v43 = vor.u32 1.1754944e-38, %v912_v28  ;;  %vm911_vm3 = vcmp.eq.f32.partialorder %v910_v29, 8.507059e+37 }
 0xa50   :  { %v920_v33 = vadd.f32 %v1422_v34, %v919_v54 }
 0xa52   :  { %v924_v39 = vsel %vm923_vm14, %v1422_v34, %v920_v33 }
 0xa53   :  { %v929_v6 = vsel %vm926_vm15, %v928_v63, %v924_v39  ;;  %v1426_v36 = vpop.eup %1425 }
 0xa54   :  { %v931_v13 = vmul.f32 2.0, %v929_v6  ;;  %v902_v40 = vmul.f32 %v1426_v36, %v899_v27  ;;  %vm907_vm0 = vweird.f32 %v1426_v36  ;;  %v1063_v27 = vrot.slane %v1059_v26, 6 }
 0xa55   :  { %vm908_vm2 = vmor %vm906_vm1, %vm907_vm0 }
 0xa56   :  { %v1343_v22 = vadd.f32 -1.0, %v931_v13  ;;  %v903_v44 = vsub.f32 1.0, %v902_v40 }
 0xa58   :  { %935 = vrot.lane.b32.xlu1 %v1343_v22, %s1486_s1  ;;  %v904_v41 = vmul.f32 %v1426_v36, %v903_v44 }
 0xa5a   :  { %v905_v60 = vadd.f32 %v1426_v36, %v904_v41 }
 0xa5c   :  { %v909_v53 = vsel %vm908_vm2, %v1426_v36, %v905_v60 }
 0xa5d   :  { %v914_v49 = vsel %vm911_vm3, %v913_v43, %v909_v53 }
 0xa5e   :  { %v933_v48 = vmul.f32 %v914_v49, %v835_v30 }
 0xaca   :  { %v936_v31 = vpop.permute.xlu1 %935 }
 0xacb   :  { %v938_v20 = vmul.f32 %v936_v31, %v914_v49 }
 0xacd   :  { %940 = vrot.lane.b32.xlu2 %v938_v20, %s1486_s1 }
 0xb27   :  { %v941_v21 = vpop.permute.xlu2 %940 }
 0xb28   :  { %v943_v32 = vadd.f32 %v941_v21, %v933_v48 }
 0xb2a   :  { %1427 = vtanh.f32 %v943_v32 }
 0xb30   :  { %v1428_v42 = vpop.eup %1427 }
 0xb31   :  { %946 = vrot.lane.b32.xlu0 %v1428_v42, %s1486_s1 }
 0xba3   :  { %v947_v0 = vpop.permute.xlu0 %946 }
 0xba4   :  { %v949_v1 = vmul.f32 %v947_v0, %v929_v6 }
 0xba6   :  { %1344 = vmatmul.msk.f32.vlgmr.msrb.gmra.mxu0 %vm315_vm9, %v949_v1  ;;  %1345 = vmatmul.msk.f32.vlgmr.msrb.gmra.mxu1 %vm315_vm9, %v949_v1  ;;  %v1058_v1 = vld [vmem:[#allocation2 + $0x18] sm:$0xc0] }
 0xc23   :  { %v998_v7 = vpop.f32.mrf.mxu1  ;;  %v978_v57 = vpop.f32.mrf.mxu0 }
 0xc24   :  { %v999_v8 = vadd.f32 %v998_v7, %v955_v4  ;;  %v979_v24 = vadd.f32 %v978_v57, %v954_v52  ;;  %v1062_v4 = vrot.slane %v1058_v1, 6  ;;  %v1171_v57 = vld [vmem:[%s2059_s4 + $0x28] sm:$0xff]  ;;  %v1170_v52 = vld [vmem:[%s2059_s4 + $0x20] sm:$0xff] }
 0xc26   :  { %v1347_v9 = vmul.f32 -1.442695, %v999_v8  ;;  %v1346_v45 = vmul.f32 -1.442695, %v979_v24  ;;  %v1169_v24 = vld [vmem:[%s2059_s4 + $0x18] sm:$0xff] }
 0xc28   :  { %1429 = vpow2.f32 %v1347_v9 }
 0xc2e   :  { %v1430_v10 = vpop.eup %1429 }
 0xc2f   :  { %v1008_v11 = vadd.f32 1.0, %v1430_v10 }
 0xc31   :  { %1431 = vrcp.f32 %v1008_v11  ;;  %v1035_v16 = vand.u32 2147483648, %v1008_v11  ;;  %v1033_v18 = vand.u32 2147483647, %v1008_v11  ;;  %vm1029_vm5 = vweird.f32 %v1008_v11 }
 0xc32   :  { %1433 = vpow2.f32 %v1346_v45  ;;  %v1168_v45 = vld [vmem:[%s2059_s4 + $0x10] sm:$0xff] }
 0xc33   :  { %v1036_v38 = vor.u32 1.1754944e-38, %v1035_v16  ;;  %vm1034_vm7 = vcmp.eq.f32.partialorder %v1033_v18, 8.507059e+37 }
 0xc37   :  { %v1432_v12 = vpop.eup %1431 }
 0xc38   :  { %v1025_v14 = vmul.f32 %v1432_v12, %v1008_v11  ;;  %vm1030_vm4 = vweird.f32 %v1432_v12  ;;  %v1434_v51 = vpop.eup %1433 }
 0xc39   :  { %vm1031_vm6 = vmor %vm1029_vm5, %vm1030_vm4  ;;  %v1007_v46 = vadd.f32 1.0, %v1434_v51  ;;  %v1167_v51 = vld [vmem:[%s2059_s4 + $0x8] sm:$0xff]  ;;  %vm1202_vm5 = vcmask 254976  }
 0xc3a   :  { %v1026_v15 = vsub.f32 1.0, %v1025_v14 }
 0xc3b   :  { %1435 = vrcp.f32 %v1007_v46  ;;  %v1020_v54 = vand.u32 2147483648, %v1007_v46  ;;  %vm1014_vm10 = vweird.f32 %v1007_v46  ;;  %v1018_v2 = vand.u32 2147483647, %v1007_v46 }
 0xc3c   :  { %v1027_v17 = vmul.f32 %v1432_v12, %v1026_v15 }
 0xc3d   :  { %v1021_v63 = vor.u32 1.1754944e-38, %v1020_v54  ;;  %vm1019_vm12 = vcmp.eq.f32.partialorder %v1018_v2, 8.507059e+37  ;;  %v1365_v2 = vld [vmem:[%s2060_s5] ss:$0 sm:$0xff] }
 0xc3e   :  { %v1028_v19 = vadd.f32 %v1432_v12, %v1027_v17 }
 0xc40   :  { %v1032_v55 = vsel %vm1031_vm6, %v1432_v12, %v1028_v19 }
 0xc41   :  { %v1037_v30 = vsel %vm1034_vm7, %v1036_v38, %v1032_v55  ;;  %v1436_v62 = vpop.eup %1435 }
 0xc42   :  { %v1039_v61 = vmul.f32 2.0, %v1037_v30  ;;  %v1010_v34 = vmul.f32 %v1436_v62, %v1007_v46  ;;  %vm1015_vm8 = vweird.f32 %v1436_v62 }
 0xc43   :  { %vm1016_vm11 = vmor %vm1014_vm10, %vm1015_vm8  ;;  %vm1250_vm10 = vcmask 261120  }
 0xc44   :  { %v1348_v58 = vadd.f32 -1.0, %v1039_v61  ;;  %v1011_v37 = vsub.f32 1.0, %v1010_v34 }
 0xc46   :  { %1043 = vrot.lane.b32.xlu1 %v1348_v58, %s1486_s1  ;;  %v1012_v35 = vmul.f32 %v1436_v62, %v1011_v37  ;;  %v1173_v58 = vld [vmem:[%s2059_s4 + $0x38] sm:$0xff] }
 0xc47   :  { %1189 = vmatpush.msra.mxu0 %v1173_v58 }
 0xc48   :  { %v1013_v59 = vadd.f32 %v1436_v62, %v1012_v35  ;;  %v1166_v35 = vld [vmem:[%s2059_s4] sm:$0xff] }
 0xc49   :  { %1190 = vmatpush.msra.mxu0 %v1172_v56 }
 0xc4a   :  { %v1017_v33 = vsel %vm1016_vm11, %v1436_v62, %v1013_v59  ;;  %vm1274_vm11 = vcmask 25600  }
 0xc4b   :  { %v1022_v6 = vsel %vm1019_vm12, %v1021_v63, %v1017_v33  ;;  %1191 = vmatpush.msra.mxu0 %v1171_v57 }
 0xc4c   :  { %v1041_v22 = vmul.f32 %v1022_v6, %v943_v32 }
 0xc4d   :  { %1192 = vmatpush.msra.mxu0 %v1170_v52 }
 0xc4f   :  { %1193 = vmatpush.msra.mxu0 %v1169_v24 }
 0xc51   :  { %1194 = vmatpush.msra.mxu0 %v1168_v45 }
 0xc53   :  { %1195 = vmatpush.msra.mxu0 %v1167_v51 }
 0xc55   :  { %1196 = vmatpush.msra.mxu0 %v1166_v35 }
 0xcb8   :  { %v1044_v39 = vpop.permute.xlu1 %1043 }
 0xcb9   :  { %v1046_v13 = vmul.f32 %v1044_v39, %v1022_v6 }
 0xcbb   :  { %1048 = vrot.lane.b32.xlu2 %v1046_v13, %s1486_s1  ;;  %v1487_v13 = vmov 32.0  }
 0xd15   :  { %v1049_v5 = vpop.permute.xlu2 %1048 }
 0xd16   :  { %v1988_v23 = vadd.f32 %v1049_v5, %v1041_v22 }
 0xd18   :  { %1437 = vtanh.f32 %v1988_v23 }
 0xd1e   :  { %v1438_v47 = vpop.eup %1437 }
 0xd1f   :  { %1054 = vrot.lane.b32.xlu0 %v1438_v47, %s1486_s1 }
 0xd91   :  { %v1055_v50 = vpop.permute.xlu0 %1054 }
 0xd92   :  { %v1057_v25 = vmul.f32 %v1055_v50, %v1037_v30 }
 0xd94   :  { %1349 = vmatmul.msk.f32.vlgmr.msrb.gmra.mxu2 %vm315_vm9, %v1057_v25  ;;  %1350 = vmatmul.msk.f32.vlgmr.msrb.gmra.mxu3 %vm315_vm9, %v1057_v25 }
 0xe17   :  { %v1106_v36 = vpop.f32.mrf.mxu3  ;;  %v1086_v3 = vpop.f32.mrf.mxu2 }
 0xe18   :  { %v1107_v40 = vadd.f32 %v1106_v36, %v1063_v27  ;;  %v1087_v7 = vadd.f32 %v1086_v3, %v1062_v4  ;;  %v1367_v4 = vld [vmem:[%s2062_s7] ss:$0 sm:$0xff] }
 0xe1a   :  { %v1352_v44 = vmul.f32 -1.442695, %v1107_v40  ;;  %v1351_v8 = vmul.f32 -1.442695, %v1087_v7 }
 0xe1c   :  { %1439 = vpow2.f32 %v1352_v44 }
 0xe22   :  { %v1440_v41 = vpop.eup %1439 }
 0xe23   :  { %v1116_v60 = vadd.f32 1.0, %v1440_v41  ;;  %v1245_v41 = vld [vmem:[%s2063_s8 + $0x18] sm:$0xff] }
 0xe24   :  { %1266 = vmatpush.msra.mxu1 %v1245_v41 }
 0xe25   :  { %1441 = vrcp.f32 %v1116_v60  ;;  %v1143_v43 = vand.u32 2147483648, %v1116_v60  ;;  %v1141_v49 = vand.u32 2147483647, %v1116_v60  ;;  %vm1137_vm14 = vweird.f32 %v1116_v60 }
 0xe26   :  { %1443 = vpow2.f32 %v1351_v8 }
 0xe27   :  { %v1144_v48 = vor.u32 1.1754944e-38, %v1143_v43  ;;  %vm1142_vm0 = vcmp.eq.f32.partialorder %v1141_v49, 8.507059e+37 }
 0xe2b   :  { %v1442_v28 = vpop.eup %1441 }
 0xe2c   :  { %v1133_v29 = vmul.f32 %v1442_v28, %v1116_v60  ;;  %vm1138_vm13 = vweird.f32 %v1442_v28  ;;  %v1444_v9 = vpop.eup %1443  ;;  %v1244_v60 = vld [vmem:[%s2063_s8 + $0x10] sm:$0xff] }
 0xe2d   :  { %vm1139_vm15 = vmor %vm1137_vm14, %vm1138_vm13  ;;  %v1115_v10 = vadd.f32 1.0, %v1444_v9  ;;  %1267 = vmatpush.msra.mxu1 %v1244_v60  ;;  %v1368_v9 = vld [vmem:[%s2064_s9] ss:$0 sm:$0xff] }
 0xe2e   :  { %v1134_v53 = vsub.f32 1.0, %v1133_v29  ;;  %v1242_v29 = vld [vmem:[%s2063_s8] sm:$0xff] }
 0xe2f   :  { %1445 = vrcp.f32 %v1115_v10  ;;  %v1128_v17 = vand.u32 2147483648, %v1115_v10  ;;  %vm1122_vm2 = vweird.f32 %v1115_v10  ;;  %v1126_v18 = vand.u32 2147483647, %v1115_v10 }
 0xe30   :  { %v1135_v31 = vmul.f32 %v1442_v28, %v1134_v53 }
 0xe31   :  { %v1129_v38 = vor.u32 1.1754944e-38, %v1128_v17  ;;  %vm1127_vm4 = vcmp.eq.f32.partialorder %v1126_v18, 8.507059e+37 }
 0xe32   :  { %v1136_v20 = vadd.f32 %v1442_v28, %v1135_v31 }
 0xe34   :  { %v1140_v21 = vsel %vm1139_vm15, %v1442_v28, %v1136_v20  ;;  %v1243_v28 = vld [vmem:[%s2063_s8 + $0x8] sm:$0xff] }
 0xe35   :  { %v1145_v32 = vsel %vm1142_vm0, %v1144_v48, %v1140_v21  ;;  %v1446_v11 = vpop.eup %1445  ;;  %1268 = vmatpush.msra.mxu1 %v1243_v28 }
 0xe36   :  { %v1147_v42 = vmul.f32 2.0, %v1145_v32  ;;  %v1118_v12 = vmul.f32 %v1446_v11, %v1115_v10  ;;  %vm1123_vm1 = vweird.f32 %v1446_v11 }
 0xe37   :  { %vm1124_vm3 = vmor %vm1122_vm2, %vm1123_vm1  ;;  %1269 = vmatpush.msra.mxu1 %v1242_v29 }
 0xe38   :  { %v1353_v0 = vadd.f32 -1.0, %v1147_v42  ;;  %v1119_v14 = vsub.f32 1.0, %v1118_v12 }
 0xe3a   :  { %1151 = vrot.lane.b32.xlu1 %v1353_v0, %s1486_s1  ;;  %v1120_v15 = vmul.f32 %v1446_v11, %v1119_v14  ;;  %v1366_v0 = vld [vmem:[%s2061_s6] ss:$0 sm:$0xff]  ;;  %s1488_s6 = smov [#allocation3]  }
 0xe3b   :  { %s1305_s7 = sshll.u32 %s1488_s6, 4  ;;  %s1306_s7 = int_to_ptr.vmem [resolvable:$true] %s1305_s7 }
 0xe3c   :  { %v1121_v16 = vadd.f32 %v1446_v11, %v1120_v15 }
 0xe3e   :  { %v1125_v19 = vsel %vm1124_vm3, %v1446_v11, %v1121_v16 }
 0xe3f   :  { %v1130_v30 = vsel %vm1127_vm4, %v1129_v38, %v1125_v19 }
 0xe40   :  { %v1149_v46 = vmul.f32 %v1130_v30, %v1988_v23 }
 0xeac   :  { %v1152_v55 = vpop.permute.xlu1 %1151 }
 0xead   :  { %v1154_v61 = vmul.f32 %v1152_v55, %v1130_v30 }
 0xeaf   :  { %1156 = vrot.lane.b32.xlu2 %v1154_v61, %s1486_s1 }
 0xf09   :  { %v1157_v62 = vpop.permute.xlu2 %1156 }
 0xf0a   :  { %v1159_v34 = vadd.f32 %v1157_v62, %v1149_v46 }
 0xf0c   :  { %1447 = vtanh.f32 %v1159_v34 }
 0xf0d   :  { %1449 = vrcp.f32 %v1487_v13 }
 0xf12   :  { %v1448_v37 = vpop.eup %1447 }
 0xf13   :  { %1162 = vrot.lane.b32.xlu0 %v1448_v37, %s1486_s1  ;;  %v1450_v22 = vpop.eup %1449 }
 0xf14   :  { %v1207_v5 = vmul.f32 32.0, %v1450_v22  ;;  %vm1211_vm6 = vweird.f32 %v1450_v22 }
 0xf16   :  { %v1208_v23 = vsub.f32 1.0, %v1207_v5 }
 0xf18   :  { %v1209_v47 = vmul.f32 %v1450_v22, %v1208_v23 }
 0xf1a   :  { %v1210_v50 = vadd.f32 %v1450_v22, %v1209_v47 }
 0xf1c   :  { %v1212_v25 = vsel %vm1211_vm6, %v1450_v22, %v1210_v50 }
 0xf85   :  { %v1163_v59 = vpop.permute.xlu0 %1162 }
 0xf86   :  { %v1165_v54 = vmul.f32 %v1163_v59, %v1145_v32 }
 0xf88   :  { %1354 = vmatmul.msk.f32.vlgmr.msra.gmra.mxu0 %vm315_vm9, %v1165_v54 }
0x1005   :  { %v1198_v33 = vpop.f32.mrf.mxu0 }
0x1006   :  { %v1199_v63 = vadd.f32 %v1365_v2, %v1198_v33 }
0x1008   :  { %v1201_v39 = vmax.f32 %v1199_v63, 0.0 }
0x100a   :  { %v1203_v6 = vsel %vm1202_vm5, %v1201_v39, 0.0 }
0x100b   :  { %1204 = vadd.xlane.f32.xlu1 %v1203_v6 }
0x107e   :  { %v1205_v26 = vpop.xlane.xlu1 %1204 }
0x107f   :  { %v1213_v27 = vmul.f32 %v1212_v25, %v1205_v26 }
0x1081   :  { %v1214_v36 = vsub.f32 %v1201_v39, %v1213_v27 }
0x1083   :  { %v1215_v40 = vmul.f32 %v1214_v36, %v1214_v36 }
0x1085   :  { %v1216_v44 = vsel %vm1202_vm5, %v1215_v40, 0.0 }
0x1086   :  { %1217 = vadd.xlane.f32.xlu2 %v1216_v44 }
0x10f9   :  { %v1218_v53 = vpop.xlane.xlu2 %1217 }
0x10fa   :  { %v1219_v43 = vmul.f32 %v1218_v53, %v1212_v25 }
0x10fc   :  { %v1220_v31 = vadd.f32 1e-05, %v1219_v43 }
0x10fe   :  { %1451 = vrsqrt.f32 %v1220_v31  ;;  %vm1227_vm7 = vweird.f32 %v1220_v31 }
0x1104   :  { %v1452_v49 = vpop.eup %1451 }
0x1105   :  { %v1222_v20 = vmul.f32 %v1452_v49, %v1220_v31  ;;  %vm1228_vm9 = vweird.f32 %v1452_v49 }
0x1106   :  { %vm1229_vm8 = vmor %vm1227_vm7, %vm1228_vm9 }
0x1107   :  { %v1223_v48 = vmul.f32 %v1452_v49, %v1222_v20 }
0x1109   :  { %v1224_v21 = vmul.f32 0.5, %v1223_v48 }
0x110b   :  { %v1225_v32 = vsub.f32 1.5, %v1224_v21 }
0x110d   :  { %v1226_v42 = vmul.f32 %v1452_v49, %v1225_v32 }
0x110f   :  { %v1230_v1 = vsel %vm1229_vm8, %v1452_v49, %v1226_v42 }
0x1110   :  { %v1231_v3 = vmul.f32 %v1230_v1, %v1214_v36 }
0x1112   :  { %v1236_v7 = vmul.f32 %v1366_v0, %v1231_v3 }
0x1114   :  { %v1241_v8 = vadd.f32 %v1367_v4, %v1236_v7 }
0x1116   :  { %1355 = vmatmul.msk.f32.vlgmr.msra.gmra.mxu1 %vm1250_vm10, %v1241_v8 }
0x1193   :  { %v1271_v10 = vpop.f32.mrf.mxu1 }
0x1194   :  { %v1272_v11 = vadd.f32 %v1368_v9, %v1271_v10 }
0x1196   :  { %v1275_v12 = vsel %vm1274_vm11, %v1272_v11, -inf }
0x1197   :  { %1276 = vmax.xlane.f32.xlu0 %v1275_v12 }
0x120a   :  { %v1277_v14 = vpop.xlane.xlu0 %1276 }
0x120b   :  { %v1278_v15 = vsub.f32 %v1272_v11, %v1277_v14 }
0x120d   :  { %v1279_v16 = vmul.f32 1.442695, %v1278_v15 }
0x120f   :  { %1453 = vpow2.f32 %v1279_v16 }
0x1215   :  { %v1454_v17 = vpop.eup %1453 }
0x1216   :  { %v1281_v18 = vsel %vm1274_vm11, %v1454_v17, 0.0 }
0x1217   :  { %1282 = vadd.xlane.f32.xlu2 %v1281_v18 }
0x128a   :  { %v1283_v19 = vpop.xlane.xlu2 %1282 }
0x128b   :  { %1455 = vrcp.f32 %v1283_v19  ;;  %v1295_v61 = vand.u32 2147483648, %v1283_v19  ;;  %v1293_v56 = vand.u32 2147483647, %v1283_v19  ;;  %vm1289_vm13 = vweird.f32 %v1283_v19 }
0x128d   :  { %v1296_v52 = vor.u32 1.1754944e-38, %v1295_v61  ;;  %vm1294_vm15 = vcmp.eq.f32.partialorder %v1293_v56, 8.507059e+37 }
0x1291   :  { %v1456_v38 = vpop.eup %1455 }
0x1292   :  { %v1285_v55 = vmul.f32 %v1456_v38, %v1283_v19  ;;  %vm1290_vm12 = vweird.f32 %v1456_v38 }
0x1293   :  { %vm1291_vm14 = vmor %vm1289_vm13, %vm1290_vm12 }
0x1294   :  { %v1286_v30 = vsub.f32 1.0, %v1285_v55 }
0x1296   :  { %v1287_v58 = vmul.f32 %v1456_v38, %v1286_v30 }
0x1298   :  { %v1288_v57 = vadd.f32 %v1456_v38, %v1287_v58 }
0x129a   :  { %v1292_v24 = vsel %vm1291_vm14, %v1456_v38, %v1288_v57 }
0x129b   :  { %v1297_v45 = vsel %vm1294_vm15, %v1296_v52, %v1292_v24 }
0x129c   :  { %v1298_v51 = vmul.f32 %v1454_v17, %v1297_v45 }
0x129e   :  { %1299 = vst.msk [vmem:[#allocation3] sm:$0x3] %vm1274_vm11, %v1298_v51 }
0x129f   :  { %1310 = dma.vmem_to_hbm [thread:$0]  %s1306_s7, 32, %s1308_s16, [#allocation4]  }
0x12a0   :  { %1481 = dma.done.wait [#allocation4], 32  }
0x12a1   :  { %1482 = vsyncadd [#allocation4], 4294967264 }
0x12a2   :  { %1315 = vsyncpa [#allocation4], 1 }

</bundles_post_ra>
